<compile_context>
chip_gen: v5e
topology: v5e:2x2
jax: 0.10.0
libtpu: 0.0.40
codegen_flags: <defaults>
</compile_context>

<pallas_src>
import jax
import jax.numpy as jnp
from jax import lax
from jax.experimental import pallas as pl
from jax.experimental.pallas import tpu as pltpu

_LANE = 128
# Finite stand-in for -inf so alpha = exp(m_prev - m_new) never produces NaN
# for rows that have not yet seen a valid (non-diagonal) column.
_NEG_INIT = -1e30


def _make_kernel(*, tm, tn, b_real, inv_temp):
    def kernel(lab_row_ref, lab_col_ref, feat_row_ref, feat_col_ref,
               row_out_ref, valid_out_ref,
               q_scr, m_scr, l_scr, sp_scr, np_scr):
        i = pl.program_id(0)
        j = pl.program_id(1)
        n_col = pl.num_programs(1)

        # ---- per-row-tile init (first column step) -------------------------
        @pl.when(j == 0)
        def _init():
            f = feat_row_ref[...].astype(jnp.float32)                 # (tm, Dp)
            inv_norm = lax.rsqrt(
                jnp.maximum(jnp.sum(f * f, axis=1, keepdims=True), 1e-24))
            # unit rows with 1/temperature folded into the per-row scale
            q_scr[...] = (f * (inv_norm * inv_temp)).astype(jnp.bfloat16)
            m_scr[...] = jnp.full((tm, 1), _NEG_INIT, dtype=jnp.float32)
            l_scr[...] = jnp.zeros((tm, 1), dtype=jnp.float32)
            sp_scr[...] = jnp.zeros((tm, 1), dtype=jnp.float32)
            np_scr[...] = jnp.zeros((tm, 1), dtype=jnp.float32)

        # ---- normalize the column tile (O(tn*Dp) << matmul) ----------------
        fc = feat_col_ref[...].astype(jnp.float32)                    # (tn, Dp)
        inv_norm_c = lax.rsqrt(
            jnp.maximum(jnp.sum(fc * fc, axis=1, keepdims=True), 1e-24))
        k = (fc * inv_norm_c).astype(jnp.bfloat16)

        # ---- similarity tile on the MXU (bf16 in, f32 accumulate) ----------
        # q @ k^T (contraction on the lane-dense Dp axis), already / temperature.
        s = lax.dot_general(q_scr[...], k, (((1,), (1,)), ((), ())),
                            preferred_element_type=jnp.float32)       # (tm, tn)

        # ---- masks: diagonal / pad-column / same-label (one bool pass) -----
        row_g = i * tm + lax.broadcasted_iota(jnp.int32, (tm, tn), 0)
        col_g = j * tn + lax.broadcasted_iota(jnp.int32, (tm, tn), 1)
        keep = jnp.logical_and(col_g < b_real, row_g != col_g)
        same = lab_row_ref[...] == lab_col_ref[...]        # (tm,1)==(1,tn)->(tm,tn)
        pos = jnp.logical_and(keep, same)

        # ---- online softmax update ------------------------------------------
        m_prev = m_scr[...]
        m_cur = jnp.max(jnp.where(keep, s, _NEG_INIT), axis=1, keepdims=True)
        m_new = jnp.maximum(m_prev, m_cur)
        alpha = jnp.exp(m_prev - m_new)
        p = jnp.where(keep, jnp.exp(s - m_new), 0.0)
        l_scr[...] = alpha * l_scr[...] + jnp.sum(p, axis=1, keepdims=True)
        sp_scr[...] = sp_scr[...] + jnp.sum(jnp.where(pos, s, 0.0),
                                            axis=1, keepdims=True)
        np_scr[...] = np_scr[...] + jnp.sum(pos.astype(jnp.float32),
                                            axis=1, keepdims=True)
        m_scr[...] = m_new

        # ---- finalize on the last column step (per-row masking BEFORE any
        #      accumulation, so NaN from empty rows never leaks) --------------
        @pl.when(j == n_col - 1)
        def _fin():
            npos = np_scr[...]
            has_pos = npos > 0.0
            lse = m_scr[...] + jnp.log(l_scr[...])        # logsumexp over non-diag
            per_row = (sp_scr[...] - npos * lse) / jnp.where(has_pos, npos, 1.0)
            row_idx = i * tm + lax.broadcasted_iota(jnp.int32, (tm, 1), 0)
            ok = jnp.logical_and(has_pos, row_idx < b_real)
            row_out_ref[...] = jnp.where(ok, per_row, 0.0)
            valid_out_ref[...] = ok.astype(jnp.float32)

    return kernel


def _pick_tile(bp, candidates):
    for c in candidates:
        if bp % c == 0:
            return c
    return _LANE


def supcon_loss(features, labels, *, temperature=0.2, scale_by_temperature=True,
                block_m=None, block_n=None):
    """features: (B, D) float, labels: (B,) int -> scalar float32 loss."""
    features = jnp.asarray(features)
    labels = jnp.asarray(labels)
    b, d = features.shape

    # Lane-dense padding of both the batch and hidden dims (zeros change
    # neither row norms nor dot products; pad rows/cols are masked in-kernel).
    bp = ((b + _LANE - 1) // _LANE) * _LANE
    dp = ((d + _LANE - 1) // _LANE) * _LANE
    feat = features
    if (bp, dp) != (b, d):
        feat = jnp.pad(feat, ((0, bp - b), (0, dp - d)))
    lab = labels.astype(jnp.int32)
    if bp != b:
        lab = jnp.pad(lab, (0, bp - b), constant_values=-1)

    # Tile sizes: prefer 256x512 (v6e/v7x MXU), fall back to 128-aligned (v5e).
    tm = int(block_m) if block_m else _pick_tile(bp, (256, 128))
    tn = int(block_n) if block_n else _pick_tile(bp, (512, 256, 128))
    assert bp % tm == 0 and bp % tn == 0, (bp, tm, tn)
    grid = (bp // tm, bp // tn)

    kernel = _make_kernel(tm=tm, tn=tn, b_real=b, inv_temp=1.0 / float(temperature))

    feat_bytes = jnp.dtype(feat.dtype).itemsize
    # Conservative per-tile VMEM footprint (double-buffered tiles, scratch and
    # a generous allowance for (tm, tn) temporaries); >=8 MiB headroom, capped
    # well under v7x's 64 MiB physical VMEM.
    vmem_est = (2 * (tm + tn) * dp * feat_bytes          # feature tiles
                + 2 * (tm * _LANE + 8 * tn) * 4          # label tiles (lane padded)
                + 4 * tm * _LANE * 4                     # (tm,1) outputs
                + tm * dp * 2 + 4 * tm * _LANE * 4       # scratch
                + 12 * tm * tn * 4)                      # (tm,tn) temporaries
    vmem_limit = int(min(max(vmem_est + (8 << 20), 32 << 20), 56 << 20))

    cost = pl.CostEstimate(
        flops=2 * bp * bp * dp + 6 * bp * dp,
        transcendentals=bp * bp + 2 * bp,
        bytes_accessed=(grid[0] + 1) * bp * dp * feat_bytes + 16 * bp)

    per_row, valid = pl.pallas_call(
        kernel,
        out_shape=(jax.ShapeDtypeStruct((bp, 1), jnp.float32),
                   jax.ShapeDtypeStruct((bp, 1), jnp.float32)),
        grid_spec=pltpu.PrefetchScalarGridSpec(
            num_scalar_prefetch=0,
            grid=grid,
            in_specs=[
                pl.BlockSpec((tm, 1), lambda i, j: (i, 0)),    # row labels
                pl.BlockSpec((1, tn), lambda i, j: (0, j)),    # column labels
                pl.BlockSpec((tm, dp), lambda i, j: (i, 0)),   # row features
                pl.BlockSpec((tn, dp), lambda i, j: (j, 0)),   # column features
            ],
            out_specs=[
                pl.BlockSpec((tm, 1), lambda i, j: (i, 0)),    # per-row mean log-prob
                pl.BlockSpec((tm, 1), lambda i, j: (i, 0)),    # per-row validity
            ],
            scratch_shapes=[
                pltpu.VMEM((tm, dp), jnp.bfloat16),   # normalized / temp-folded row tile
                pltpu.VMEM((tm, 1), jnp.float32),     # running max
                pltpu.VMEM((tm, 1), jnp.float32),     # running denominator
                pltpu.VMEM((tm, 1), jnp.float32),     # running positive-logit sum
                pltpu.VMEM((tm, 1), jnp.float32),     # running positive count
            ]),
        compiler_params=pltpu.CompilerParams(
            dimension_semantics=("parallel", "arbitrary"),
            vmem_limit_bytes=vmem_limit),
        cost_estimate=cost,
    )(lab.reshape(bp, 1), lab.reshape(1, bp), feat, feat)

    # Tiny O(B) epilogue: mean over rows that have at least one positive.
    n_valid = jnp.sum(valid)
    total = jnp.sum(per_row)
    loss = -total / jnp.maximum(n_valid, 1.0)
    if scale_by_temperature:
        loss = loss * temperature
    return jnp.where(n_valid > 0.0, loss, jnp.float32(0.0))


def _supcon_loss_ref(features, labels, temperature=0.2, scale_by_temperature=True):
    """Pure-JAX f32 reference mirroring the PyTorch forward (for verification)."""
    f = features.astype(jnp.float32)
    fn = f / jnp.maximum(jnp.linalg.norm(f, axis=1, keepdims=True), 1e-12)
    B = f.shape[0]
    mask = (labels.reshape(-1, 1) == labels.reshape(1, -1)).astype(jnp.float32)
    adc = (fn @ fn.T) / temperature
    logits = adc - jnp.max(adc, axis=1, keepdims=True)
    exp_logits = jnp.exp(logits)
    logits_mask = 1.0 - jnp.eye(B, dtype=jnp.float32)
    pos = mask * logits_mask
    neg = 1.0 - mask
    num_pos = jnp.sum(pos, axis=1)
    denom = jnp.sum(exp_logits * neg, axis=1, keepdims=True) + \
            jnp.sum(exp_logits * pos, axis=1, keepdims=True)
    log_probs = logits - jnp.log(denom)
    sum_lp = jnp.sum(log_probs * pos, axis=1)
    valid = num_pos > 0
    per_row = jnp.where(valid, sum_lp / jnp.where(valid, num_pos, 1.0), 0.0)
    n_valid = jnp.sum(valid.astype(jnp.float32))
    loss = -jnp.sum(per_row) / jnp.maximum(n_valid, 1.0)
    if scale_by_temperature:
        loss = loss * temperature
    return jnp.where(n_valid > 0, loss, 0.0)


if __name__ == "__main__":
    key = jax.random.PRNGKey(0)
    k1, k2 = jax.random.split(key)

    # Case 1: tiny batch (single tile after padding to 128).
    b1, d1 = 8, 32
    feats1 = jax.random.normal(k1, (b1, d1), dtype=jnp.float32)
    labels1 = jnp.array([0, 1, 0, 2, 1, 2, 0, 1], dtype=jnp.int32)
    loss1 = jax.block_until_ready(
        supcon_loss(feats1, labels1, temperature=0.2, scale_by_temperature=True))
    ref1 = _supcon_loss_ref(feats1, labels1)
    # Tolerance sized for the intentional bf16 MXU matmul; all other math is f32.
    assert jnp.allclose(loss1, ref1, atol=2e-2, rtol=2e-2), (loss1, ref1)

    # Case 2: ragged batch exercising batch padding, pad-row/column masking and
    # the multi-tile online-softmax path (grid = (2, 2) with 128x128 tiles).
    b2, d2 = 200, 40
    feats2 = jax.random.normal(k2, (b2, d2), dtype=jnp.float32)
    labels2 = (jnp.arange(b2, dtype=jnp.int32) * 7) % 13
    loss2 = jax.block_until_ready(
        supcon_loss(feats2, labels2, temperature=0.2, scale_by_temperature=True,
                    block_m=128, block_n=128))
    ref2 = _supcon_loss_ref(feats2, labels2)
    assert jnp.allclose(loss2, ref2, atol=2e-2, rtol=2e-2), (loss2, ref2)

    print("KERNEL_OK")
</pallas_src>

<mosaic_0001>
module attributes {stable_mosaic.version = 11 : i64} {
  func.func @kernel(%arg0: i32, %arg1: i32, %arg2: memref<128x1xi32, #tpu.memory_space<vmem>>, %arg3: memref<1x128xi32, #tpu.memory_space<vmem>>, %arg4: memref<128x128xf32, #tpu.memory_space<vmem>>, %arg5: memref<128x128xf32, #tpu.memory_space<vmem>>, %arg6: memref<128x1xf32, #tpu.memory_space<vmem>>, %arg7: memref<128x1xf32, #tpu.memory_space<vmem>>, %arg8: memref<128x128xbf16, #tpu.memory_space<vmem>>, %arg9: memref<128x1xf32, #tpu.memory_space<vmem>>, %arg10: memref<128x1xf32, #tpu.memory_space<vmem>>, %arg11: memref<128x1xf32, #tpu.memory_space<vmem>>, %arg12: memref<128x1xf32, #tpu.memory_space<vmem>>) attributes {dimension_semantics = [#tpu.dimension_semantics<parallel>, #tpu.dimension_semantics<arbitrary>], iteration_bounds = array<i64: 1, 1>, scalar_prefetch = 0 : i64, scratch_operands = 5 : i64, tpu.core_type = #tpu.core_type<tc>, window_params = [{transform_indices = @transform_0, window_bounds = array<i64: 128, 1>}, {transform_indices = @transform_1, window_bounds = array<i64: 1, 128>}, {transform_indices = @transform_2, window_bounds = array<i64: 128, 128>}, {transform_indices = @transform_3, window_bounds = array<i64: 128, 128>}, {transform_indices = @transform_4, window_bounds = array<i64: 128, 1>}, {transform_indices = @transform_5, window_bounds = array<i64: 128, 1>}]} {
    %c0_i32 = arith.constant 0 : i32
    %0 = arith.cmpi eq, %arg1, %c0_i32 : i32
    %1 = arith.extui %0 : i1 to i32
    %c0_i32_0 = arith.constant 0 : i32
    %2 = arith.cmpi ne, %1, %c0_i32_0 : i32
    scf.if %2 {
      %c0_36 = arith.constant 0 : index
      %c0_37 = arith.constant 0 : index
      %70 = vector.load %arg4[%c0_36, %c0_37] : memref<128x128xf32, #tpu.memory_space<vmem>>, vector<128x128xf32>
      %71 = arith.mulf %70, %70 : vector<128x128xf32>
      %cst_38 = arith.constant dense<0.000000e+00> : vector<128xf32>
      %72 = vector.multi_reduction <add>, %71, %cst_38 [1] : vector<128x128xf32> to vector<128xf32>
      %73 = vector.shape_cast %72 : vector<128xf32> to vector<128x1xf32>
      %cst_39 = arith.constant 1.000000e-24 : f32
      %74 = vector.broadcast %cst_39 : f32 to vector<128x1xf32>
      %75 = arith.maximumf %73, %74 : vector<128x1xf32>
      %76 = math.rsqrt %75 : vector<128x1xf32>
      %cst_40 = arith.constant 5.000000e+00 : f32
      %77 = vector.broadcast %cst_40 : f32 to vector<128x1xf32>
      %78 = arith.mulf %76, %77 : vector<128x1xf32>
      %79 = vector.broadcast %78 : vector<128x1xf32> to vector<128x128xf32>
      %80 = arith.mulf %70, %79 : vector<128x128xf32>
      %81 = arith.truncf %80 : vector<128x128xf32> to vector<128x128xbf16>
      %c0_41 = arith.constant 0 : index
      %c0_42 = arith.constant 0 : index
      %82 = vector.load %arg8[%c0_41, %c0_42] : memref<128x128xbf16, #tpu.memory_space<vmem>>, vector<128x128xbf16>
      tpu.vector_store %arg8[%c0_41, %c0_42], %81 {strides = array<i32>} : memref<128x128xbf16, #tpu.memory_space<vmem>>, vector<128x128xbf16>,
      %cst_43 = arith.constant -1.000000e+30 : f32
      %83 = vector.broadcast %cst_43 : f32 to vector<128x1xf32>
      %c0_44 = arith.constant 0 : index
      %c0_45 = arith.constant 0 : index
      %84 = vector.load %arg9[%c0_44, %c0_45] : memref<128x1xf32, #tpu.memory_space<vmem>>, vector<128x1xf32>
      tpu.vector_store %arg9[%c0_44, %c0_45], %83 {strides = array<i32>} : memref<128x1xf32, #tpu.memory_space<vmem>>, vector<128x1xf32>,
      %cst_46 = arith.constant 0.000000e+00 : f32
      %85 = vector.broadcast %cst_46 : f32 to vector<128x1xf32>
      %c0_47 = arith.constant 0 : index
      %c0_48 = arith.constant 0 : index
      %86 = vector.load %arg10[%c0_47, %c0_48] : memref<128x1xf32, #tpu.memory_space<vmem>>, vector<128x1xf32>
      tpu.vector_store %arg10[%c0_47, %c0_48], %85 {strides = array<i32>} : memref<128x1xf32, #tpu.memory_space<vmem>>, vector<128x1xf32>,
      %cst_49 = arith.constant 0.000000e+00 : f32
      %87 = vector.broadcast %cst_49 : f32 to vector<128x1xf32>
      %c0_50 = arith.constant 0 : index
      %c0_51 = arith.constant 0 : index
      %88 = vector.load %arg11[%c0_50, %c0_51] : memref<128x1xf32, #tpu.memory_space<vmem>>, vector<128x1xf32>
      tpu.vector_store %arg11[%c0_50, %c0_51], %87 {strides = array<i32>} : memref<128x1xf32, #tpu.memory_space<vmem>>, vector<128x1xf32>,
      %cst_52 = arith.constant 0.000000e+00 : f32
      %89 = vector.broadcast %cst_52 : f32 to vector<128x1xf32>
      %c0_53 = arith.constant 0 : index
      %c0_54 = arith.constant 0 : index
      %90 = vector.load %arg12[%c0_53, %c0_54] : memref<128x1xf32, #tpu.memory_space<vmem>>, vector<128x1xf32>
      tpu.vector_store %arg12[%c0_53, %c0_54], %89 {strides = array<i32>} : memref<128x1xf32, #tpu.memory_space<vmem>>, vector<128x1xf32>,
    } else {
    }
    %c0 = arith.constant 0 : index
    %c0_1 = arith.constant 0 : index
    %3 = vector.load %arg5[%c0, %c0_1] : memref<128x128xf32, #tpu.memory_space<vmem>>, vector<128x128xf32>
    %4 = arith.mulf %3, %3 : vector<128x128xf32>
    %cst = arith.constant dense<0.000000e+00> : vector<128xf32>
    %5 = vector.multi_reduction <add>, %4, %cst [1] : vector<128x128xf32> to vector<128xf32>
    %6 = vector.shape_cast %5 : vector<128xf32> to vector<128x1xf32>
    %cst_2 = arith.constant 1.000000e-24 : f32
    %7 = vector.broadcast %cst_2 : f32 to vector<128x1xf32>
    %8 = arith.maximumf %6, %7 : vector<128x1xf32>
    %9 = math.rsqrt %8 : vector<128x1xf32>
    %10 = vector.broadcast %9 : vector<128x1xf32> to vector<128x128xf32>
    %11 = arith.mulf %3, %10 : vector<128x128xf32>
    %12 = arith.truncf %11 : vector<128x128xf32> to vector<128x128xbf16>
    %c0_3 = arith.constant 0 : index
    %c0_4 = arith.constant 0 : index
    %13 = vector.load %arg8[%c0_3, %c0_4] : memref<128x128xbf16, #tpu.memory_space<vmem>>, vector<128x128xbf16>
    %cst_5 = arith.constant dense<0.000000e+00> : vector<128x128xf32>
    %14 = tpu.matmul %13, %12, %cst_5 {dimension_numbers = #tpu.dot_dimension_numbers<[1], [1], [0], [0], [0, 0, 1, 0], [], []>} : vector<128x128xbf16>, vector<128x128xbf16>, vector<128x128xf32> -> vector<128x128xf32>
    %c128_i32 = arith.constant 128 : i32
    %15 = arith.muli %arg0, %c128_i32 : i32
    %16 = tpu.iota {dimensions = array<i32: 0>} : vector<128x128xi32>
    %17 = vector.broadcast %15 : i32 to vector<128x128xi32>
    %18 = arith.addi %17, %16 : vector<128x128xi32>
    %c128_i32_6 = arith.constant 128 : i32
    %19 = arith.muli %arg1, %c128_i32_6 : i32
    %20 = tpu.iota {dimensions = array<i32: 1>} : vector<128x128xi32>
    %21 = vector.broadcast %19 : i32 to vector<128x128xi32>
    %22 = arith.addi %21, %20 : vector<128x128xi32>
    %c8_i32 = arith.constant 8 : i32
    %23 = vector.broadcast %c8_i32 : i32 to vector<128x128xi32>
    %24 = arith.cmpi slt, %22, %23 : vector<128x128xi32>
    %25 = arith.cmpi ne, %18, %22 : vector<128x128xi32>
    %26 = arith.andi %24, %25 : vector<128x128xi1>
    %c0_7 = arith.constant 0 : index
    %c0_8 = arith.constant 0 : index
    %27 = vector.load %arg2[%c0_7, %c0_8] : memref<128x1xi32, #tpu.memory_space<vmem>>, vector<128x1xi32>
    %c0_9 = arith.constant 0 : index
    %c0_10 = arith.constant 0 : index
    %28 = vector.load %arg3[%c0_9, %c0_10] : memref<1x128xi32, #tpu.memory_space<vmem>>, vector<1x128xi32>
    %29 = vector.broadcast %27 : vector<128x1xi32> to vector<128x128xi32>
    %30 = vector.broadcast %28 : vector<1x128xi32> to vector<128x128xi32>
    %31 = arith.cmpi eq, %29, %30 : vector<128x128xi32>
    %32 = arith.andi %26, %31 : vector<128x128xi1>
    %c0_11 = arith.constant 0 : index
    %c0_12 = arith.constant 0 : index
    %33 = vector.load %arg9[%c0_11, %c0_12] : memref<128x1xf32, #tpu.memory_space<vmem>>, vector<128x1xf32>
    %cst_13 = arith.constant -1.000000e+30 : f32
    %34 = vector.broadcast %cst_13 : f32 to vector<128x128xf32>
    %35 = arith.select %26, %14, %34 : vector<128x128xi1>, vector<128x128xf32>
    %cst_14 = arith.constant dense<0xFF800000> : vector<128xf32>
    %36 = vector.multi_reduction <maximumf>, %35, %cst_14 [1] : vector<128x128xf32> to vector<128xf32>
    %37 = vector.shape_cast %36 : vector<128xf32> to vector<128x1xf32>
    %38 = arith.maximumf %33, %37 : vector<128x1xf32>
    %39 = arith.subf %33, %38 : vector<128x1xf32>
    %40 = math.exp %39 : vector<128x1xf32>
    %41 = vector.broadcast %38 : vector<128x1xf32> to vector<128x128xf32>
    %42 = arith.subf %14, %41 : vector<128x128xf32>
    %43 = math.exp %42 : vector<128x128xf32>
    %cst_15 = arith.constant 0.000000e+00 : f32
    %44 = vector.broadcast %cst_15 : f32 to vector<128x128xf32>
    %45 = arith.select %26, %43, %44 : vector<128x128xi1>, vector<128x128xf32>
    %c0_16 = arith.constant 0 : index
    %c0_17 = arith.constant 0 : index
    %46 = vector.load %arg10[%c0_16, %c0_17] : memref<128x1xf32, #tpu.memory_space<vmem>>, vector<128x1xf32>
    %47 = arith.mulf %40, %46 : vector<128x1xf32>
    %cst_18 = arith.constant dense<0.000000e+00> : vector<128xf32>
    %48 = vector.multi_reduction <add>, %45, %cst_18 [1] : vector<128x128xf32> to vector<128xf32>
    %49 = vector.shape_cast %48 : vector<128xf32> to vector<128x1xf32>
    %50 = arith.addf %47, %49 : vector<128x1xf32>
    %c0_19 = arith.constant 0 : index
    %c0_20 = arith.constant 0 : index
    %51 = vector.load %arg10[%c0_19, %c0_20] : memref<128x1xf32, #tpu.memory_space<vmem>>, vector<128x1xf32>
    tpu.vector_store %arg10[%c0_19, %c0_20], %50 {strides = array<i32>} : memref<128x1xf32, #tpu.memory_space<vmem>>, vector<128x1xf32>,
    %c0_21 = arith.constant 0 : index
    %c0_22 = arith.constant 0 : index
    %52 = vector.load %arg11[%c0_21, %c0_22] : memref<128x1xf32, #tpu.memory_space<vmem>>, vector<128x1xf32>
    %cst_23 = arith.constant 0.000000e+00 : f32
    %53 = vector.broadcast %cst_23 : f32 to vector<128x128xf32>
    %54 = arith.select %32, %14, %53 : vector<128x128xi1>, vector<128x128xf32>
    %cst_24 = arith.constant dense<0.000000e+00> : vector<128xf32>
    %55 = vector.multi_reduction <add>, %54, %cst_24 [1] : vector<128x128xf32> to vector<128xf32>
    %56 = vector.shape_cast %55 : vector<128xf32> to vector<128x1xf32>
    %57 = arith.addf %52, %56 : vector<128x1xf32>
    %c0_25 = arith.constant 0 : index
    %c0_26 = arith.constant 0 : index
    %58 = vector.load %arg11[%c0_25, %c0_26] : memref<128x1xf32, #tpu.memory_space<vmem>>, vector<128x1xf32>
    tpu.vector_store %arg11[%c0_25, %c0_26], %57 {strides = array<i32>} : memref<128x1xf32, #tpu.memory_space<vmem>>, vector<128x1xf32>,
    %c0_27 = arith.constant 0 : index
    %c0_28 = arith.constant 0 : index
    %59 = vector.load %arg12[%c0_27, %c0_28] : memref<128x1xf32, #tpu.memory_space<vmem>>, vector<128x1xf32>
    %60 = arith.extui %32 : vector<128x128xi1> to vector<128x128xi32>
    %61 = arith.sitofp %60 : vector<128x128xi32> to vector<128x128xf32>
    %cst_29 = arith.constant dense<0.000000e+00> : vector<128xf32>
    %62 = vector.multi_reduction <add>, %61, %cst_29 [1] : vector<128x128xf32> to vector<128xf32>
    %63 = vector.shape_cast %62 : vector<128xf32> to vector<128x1xf32>
    %64 = arith.addf %59, %63 : vector<128x1xf32>
    %c0_30 = arith.constant 0 : index
    %c0_31 = arith.constant 0 : index
    %65 = vector.load %arg12[%c0_30, %c0_31] : memref<128x1xf32, #tpu.memory_space<vmem>>, vector<128x1xf32>
    tpu.vector_store %arg12[%c0_30, %c0_31], %64 {strides = array<i32>} : memref<128x1xf32, #tpu.memory_space<vmem>>, vector<128x1xf32>,
    %c0_32 = arith.constant 0 : index
    %c0_33 = arith.constant 0 : index
    %66 = vector.load %arg9[%c0_32, %c0_33] : memref<128x1xf32, #tpu.memory_space<vmem>>, vector<128x1xf32>
    tpu.vector_store %arg9[%c0_32, %c0_33], %38 {strides = array<i32>} : memref<128x1xf32, #tpu.memory_space<vmem>>, vector<128x1xf32>,
    %c0_i32_34 = arith.constant 0 : i32
    %67 = arith.cmpi eq, %arg1, %c0_i32_34 : i32
    %68 = arith.extui %67 : i1 to i32
    %c0_i32_35 = arith.constant 0 : i32
    %69 = arith.cmpi ne, %68, %c0_i32_35 : i32
    scf.if %69 {
      %c0_36 = arith.constant 0 : index
      %c0_37 = arith.constant 0 : index
      %70 = vector.load %arg12[%c0_36, %c0_37] : memref<128x1xf32, #tpu.memory_space<vmem>>, vector<128x1xf32>
      %cst_38 = arith.constant 0.000000e+00 : f32
      %71 = vector.broadcast %cst_38 : f32 to vector<128x1xf32>
      %72 = arith.cmpf ogt, %70, %71 : vector<128x1xf32>
      %c0_39 = arith.constant 0 : index
      %c0_40 = arith.constant 0 : index
      %73 = vector.load %arg9[%c0_39, %c0_40] : memref<128x1xf32, #tpu.memory_space<vmem>>, vector<128x1xf32>
      %c0_41 = arith.constant 0 : index
      %c0_42 = arith.constant 0 : index
      %74 = vector.load %arg10[%c0_41, %c0_42] : memref<128x1xf32, #tpu.memory_space<vmem>>, vector<128x1xf32>
      %75 = math.log %74 : vector<128x1xf32>
      %76 = arith.addf %73, %75 : vector<128x1xf32>
      %c0_43 = arith.constant 0 : index
      %c0_44 = arith.constant 0 : index
      %77 = vector.load %arg11[%c0_43, %c0_44] : memref<128x1xf32, #tpu.memory_space<vmem>>, vector<128x1xf32>
      %78 = arith.mulf %70, %76 : vector<128x1xf32>
      %79 = arith.subf %77, %78 : vector<128x1xf32>
      %cst_45 = arith.constant 1.000000e+00 : f32
      %80 = vector.broadcast %cst_45 : f32 to vector<128x1xf32>
      %81 = arith.select %72, %70, %80 : vector<128x1xi1>, vector<128x1xf32>
      %82 = arith.divf %79, %81 : vector<128x1xf32>
      %c128_i32_46 = arith.constant 128 : i32
      %83 = arith.muli %arg0, %c128_i32_46 : i32
      %84 = tpu.iota {dimensions = array<i32: 0>} : vector<128x1xi32>
      %85 = vector.broadcast %83 : i32 to vector<128x1xi32>
      %86 = arith.addi %85, %84 : vector<128x1xi32>
      %c8_i32_47 = arith.constant 8 : i32
      %87 = vector.broadcast %c8_i32_47 : i32 to vector<128x1xi32>
      %88 = arith.cmpi slt, %86, %87 : vector<128x1xi32>
      %89 = arith.andi %72, %88 : vector<128x1xi1>
      %cst_48 = arith.constant 0.000000e+00 : f32
      %90 = vector.broadcast %cst_48 : f32 to vector<128x1xf32>
      %91 = arith.select %89, %82, %90 : vector<128x1xi1>, vector<128x1xf32>
      %c0_49 = arith.constant 0 : index
      %c0_50 = arith.constant 0 : index
      %92 = vector.load %arg6[%c0_49, %c0_50] : memref<128x1xf32, #tpu.memory_space<vmem>>, vector<128x1xf32>
      tpu.vector_store %arg6[%c0_49, %c0_50], %91 {strides = array<i32>} : memref<128x1xf32, #tpu.memory_space<vmem>>, vector<128x1xf32>,
      %93 = arith.extui %89 : vector<128x1xi1> to vector<128x1xi32>
      %94 = arith.sitofp %93 : vector<128x1xi32> to vector<128x1xf32>
      %c0_51 = arith.constant 0 : index
      %c0_52 = arith.constant 0 : index
      %95 = vector.load %arg7[%c0_51, %c0_52] : memref<128x1xf32, #tpu.memory_space<vmem>>, vector<128x1xf32>
      tpu.vector_store %arg7[%c0_51, %c0_52], %94 {strides = array<i32>} : memref<128x1xf32, #tpu.memory_space<vmem>>, vector<128x1xf32>,
    } else {
    }
    return
  }
  func.func @transform_0(%arg0: i32, %arg1: i32) -> (i32, i32) {
    %c0_i32 = arith.constant 0 : i32
    %c0_i32_0 = arith.constant 0 : i32
    return %arg0, %c0_i32 : i32, i32
  }
  func.func @transform_1(%arg0: i32, %arg1: i32) -> (i32, i32) {
    %c0_i32 = arith.constant 0 : i32
    %c0_i32_0 = arith.constant 0 : i32
    return %c0_i32, %arg1 : i32, i32
  }
  func.func @transform_2(%arg0: i32, %arg1: i32) -> (i32, i32) {
    %c0_i32 = arith.constant 0 : i32
    %c0_i32_0 = arith.constant 0 : i32
    return %arg0, %c0_i32 : i32, i32
  }
  func.func @transform_3(%arg0: i32, %arg1: i32) -> (i32, i32) {
    %c0_i32 = arith.constant 0 : i32
    %c0_i32_0 = arith.constant 0 : i32
    return %arg1, %c0_i32 : i32, i32
  }
  func.func @transform_4(%arg0: i32, %arg1: i32) -> (i32, i32) {
    %c0_i32 = arith.constant 0 : i32
    %c0_i32_0 = arith.constant 0 : i32
    return %arg0, %c0_i32 : i32, i32
  }
  func.func @transform_5(%arg0: i32, %arg1: i32) -> (i32, i32) {
    %c0_i32 = arith.constant 0 : i32
    %c0_i32_0 = arith.constant 0 : i32
    return %arg0, %c0_i32 : i32, i32
  }
}

</mosaic_0001>

<bundles_post_ra>
// kernel: tpu_custom_call.1
= control target key start
LH: loop header
LB: loop body
LE: loop exit
PB: predicated region body
PF: predicated region fallthrough
CT: control target
= control target key end

     0   :  { %11 = vsyncpa [#allocation8], 0  ;;  %s2392_s21 = smov [#allocation7]   ;;  %s2393_s23 = smov 128   ;;  %s4116_s0 = inlined_call_operand.vmem [shape: s32[128,1], index: 0, kind: input, shape index: {}]   ;;  %s4117_s1 = inlined_call_operand.vmem [shape: s32[1,128], index: 1, kind: input, shape index: {}]   ;;  %s4118_s2 = inlined_call_operand.vmem [shape: f32[128,128], index: 2, kind: input, shape index: {}]   ;;  %s4119_s3 = inlined_call_operand.hbm [shape: f32[128,128], index: 3, kind: input, shape index: {}]   ;;  %s4120_s4 = inlined_call_operand.vmem [shape: f32[128,1], index: 4, kind: output, shape index: {0}]   ;;  %s4121_s5 = inlined_call_operand.vmem [shape: f32[128,1], index: 5, kind: output, shape index: {1}]  }
   0x1   :  { %s22_s20 = sshll.u32 %s4119_s3, 4  ;;  %s24_s22 = sshll.u32 %s2392_s21, 4  ;;  %s23_s20 = int_to_ptr.hbm [resolvable:$true] %s22_s20  ;;  %s25_s22 = int_to_ptr.vmem [resolvable:$true] %s24_s22 }
   0x2   :  { %s2394_s24 = smov 8  }
   0x3   :  { %30 = dma.hbm_to_vmem [thread:$0]  %s23_s20, 2048, %s25_s22, [#allocation8], %s2393_s23, %s2393_s23, %s2394_s24  }
   0x4   :  { %2390 = dma.done.wait [#allocation8], 2048  }
   0x5   :  { %2391 = vsyncadd [#allocation8], 4294965248  ;;  %vm4122_vm0 = vcmask 7168   ;;  %v4151_v0 = vmov 0.0   ;;  %v2469_v1 = vld [vmem:[%s4118_s2 + $0x20] sm:$0xff]  ;;  %v2474_v2 = vld [vmem:[%s4118_s2 + $0x10] sm:$0xff] }
   0x6   :  { %2017 = vst.msk [vmem:[%s4120_s4 + $0x8] sm:$0xff] %vm4122_vm0, %v4151_v0  ;;  %v2479_v3 = vld [vmem:[%s4118_s2] sm:$0xff]  ;;  %v59_v4 = vmul.f32 %v2469_v1, %v2469_v1  ;;  %v57_v5 = vmul.f32 %v2474_v2, %v2474_v2  ;;  %v2510_v7 = vld [vmem:[%s4118_s2 + $0x28] sm:$0xff]  ;;  %v2515_v8 = vld [vmem:[%s4118_s2 + $0x18] sm:$0xff] }
   0x7   :  { %2018 = vst.msk [vmem:[%s4120_s4 + $0x10] sm:$0xff] %vm4122_vm0, %v4151_v0  ;;  %v55_v6 = vmul.f32 %v2479_v3, %v2479_v3  ;;  %v2525_v9 = vld [vmem:[%s4118_s2 + $0x8] sm:$0xff]  ;;  %v60_v10 = vmul.f32 %v2510_v7, %v2510_v7  ;;  %v58_v11 = vmul.f32 %v2515_v8, %v2515_v8  ;;  %v2571_v13 = vld [vmem:[%s4118_s2 + $0x40] sm:$0xff]  ;;  %v2576_v14 = vld [vmem:[%s4118_s2 + $0x38] sm:$0xff] }
   0x8   :  { %2019 = vst.msk [vmem:[%s4120_s4 + $0x18] sm:$0xff] %vm4122_vm0, %v4151_v0  ;;  %79 = vadd.xlane.f32.xlu2 %v59_v4  ;;  %75 = vadd.xlane.f32.xlu1 %v57_v5  ;;  %v56_v12 = vmul.f32 %v2525_v9, %v2525_v9  ;;  %v2586_v15 = vld [vmem:[%s4118_s2 + $0x30] sm:$0xff]  ;;  %v63_v16 = vmul.f32 %v2571_v13, %v2571_v13  ;;  %v2632_v19 = vld [vmem:[%s4118_s2 + $0x58] sm:$0xff]  ;;  %v2647_v21 = vld [vmem:[%s4118_s2 + $0x48] sm:$0xff] }
   0x9   :  { %2020 = vst.msk [vmem:[%s4120_s4 + $0x20] sm:$0xff] %vm4122_vm0, %v4151_v0  ;;  %71 = vadd.xlane.f32.xlu0 %v55_v6  ;;  %v62_v17 = vmul.f32 %v2576_v14, %v2576_v14  ;;  %v61_v18 = vmul.f32 %v2586_v15, %v2586_v15  ;;  %v2637_v20 = vld [vmem:[%s4118_s2 + $0x50] sm:$0xff]  ;;  %v66_v22 = vmul.f32 %v2632_v19, %v2632_v19  ;;  %v2683_v26 = vld [vmem:[%s4118_s2 + $0x68] sm:$0xff]  ;;  %v2690_v27 = vld [vmem:[%s4118_s2 + $0x60] sm:$0xff] }
   0xa   :  { %2021 = vst.msk [vmem:[%s4120_s4 + $0x28] sm:$0xff] %vm4122_vm0, %v4151_v0  ;;  %v65_v23 = vmul.f32 %v2637_v20, %v2637_v20  ;;  %v64_v24 = vmul.f32 %v2647_v21, %v2647_v21  ;;  %v2678_v25 = vld [vmem:[%s4118_s2 + $0x70] sm:$0xff]  ;;  %v68_v29 = vmul.f32 %v2683_v26, %v2683_v26  ;;  %v67_v30 = vmul.f32 %v2690_v27, %v2690_v27  ;;  %v2712_v31 = vld [vmem:[#allocation7 + $0x8] sm:$0xff]  ;;  %v2714_v32 = vld [vmem:[#allocation7] sm:$0xff] }
   0xb   :  { %2022 = vst.msk [vmem:[%s4120_s4 + $0x30] sm:$0xff] %vm4122_vm0, %v4151_v0  ;;  %v69_v28 = vmul.f32 %v2678_v25, %v2678_v25  ;;  %v2721_v33 = vld [vmem:[%s4118_s2 + $0x78] sm:$0xff]  ;;  %v425_v34 = vmul.f32 %v2712_v31, %v2712_v31  ;;  %v424_v35 = vmul.f32 %v2714_v32, %v2714_v32  ;;  %v412_v37 = vld [vmem:[#allocation7 + $0x20] sm:$0xff]  ;;  %v2747_v39 = vld [vmem:[#allocation7 + $0x10] sm:$0xff] }
   0xc   :  { %2023 = vst.msk [vmem:[%s4120_s4 + $0x38] sm:$0xff] %vm4122_vm0, %v4151_v0  ;;  %v70_v36 = vmul.f32 %v2721_v33, %v2721_v33  ;;  %v2743_v38 = vld [vmem:[#allocation7 + $0x18] sm:$0xff]  ;;  %v428_v40 = vmul.f32 %v412_v37, %v412_v37  ;;  %v426_v42 = vmul.f32 %v2747_v39, %v2747_v39  ;;  %v414_v44 = vld [vmem:[#allocation7 + $0x30] sm:$0xff]  ;;  %v413_v45 = vld [vmem:[#allocation7 + $0x28] sm:$0xff] }
   0xd   :  { %2024 = vst.msk [vmem:[%s4120_s4 + $0x40] sm:$0xff] %vm4122_vm0, %v4151_v0  ;;  %v427_v41 = vmul.f32 %v2743_v38, %v2743_v38  ;;  %v415_v43 = vld [vmem:[#allocation7 + $0x38] sm:$0xff]  ;;  %v430_v47 = vmul.f32 %v414_v44, %v414_v44  ;;  %v429_v48 = vmul.f32 %v413_v45, %v413_v45  ;;  %v418_v49 = vld [vmem:[#allocation7 + $0x50] sm:$0xff]  ;;  %v417_v50 = vld [vmem:[#allocation7 + $0x48] sm:$0xff] }
   0xe   :  { %2025 = vst.msk [vmem:[%s4120_s4 + $0x48] sm:$0xff] %vm4122_vm0, %v4151_v0  ;;  %v431_v46 = vmul.f32 %v415_v43, %v415_v43  ;;  %v416_v51 = vld [vmem:[#allocation7 + $0x40] sm:$0xff]  ;;  %v434_v52 = vmul.f32 %v418_v49, %v418_v49  ;;  %v433_v53 = vmul.f32 %v417_v50, %v417_v50  ;;  %v2799_v55 = vld [vmem:[#allocation7 + $0x68] sm:$0xff]  ;;  %v2805_v57 = vld [vmem:[#allocation7 + $0x58] sm:$0xff] }
   0xf   :  { %2026 = vst.msk [vmem:[%s4120_s4 + $0x50] sm:$0xff] %vm4122_vm0, %v4151_v0  ;;  %v432_v54 = vmul.f32 %v416_v51, %v416_v51  ;;  %v2801_v56 = vld [vmem:[#allocation7 + $0x60] sm:$0xff]  ;;  %v437_v58 = vmul.f32 %v2799_v55, %v2799_v55  ;;  %v435_v60 = vmul.f32 %v2805_v57, %v2805_v57  ;;  %v2817_v61 = vld [vmem:[#allocation7 + $0x78] sm:$0xff]  ;;  %v2819_v62 = vld [vmem:[#allocation7 + $0x70] sm:$0xff] }
  0x10   :  { %2027 = vst.msk [vmem:[%s4120_s4 + $0x58] sm:$0xff] %vm4122_vm0, %v4151_v0  ;;  %81 = vadd.xlane.f32.xlu2 %v60_v10  ;;  %77 = vadd.xlane.f32.xlu1 %v58_v11  ;;  %v436_v59 = vmul.f32 %v2801_v56, %v2801_v56  ;;  %v439_v63 = vmul.f32 %v2817_v61, %v2817_v61 }
  0x11   :  { %2028 = vst.msk [vmem:[%s4120_s4 + $0x60] sm:$0xff] %vm4122_vm0, %v4151_v0  ;;  %73 = vadd.xlane.f32.xlu0 %v56_v12  ;;  %v438_v4 = vmul.f32 %v2819_v62, %v2819_v62 }
  0x12   :  { %2029 = vst.msk [vmem:[%s4120_s4 + $0x68] sm:$0xff] %vm4122_vm0, %v4151_v0 }
  0x13   :  { %2030 = vst.msk [vmem:[%s4120_s4 + $0x70] sm:$0xff] %vm4122_vm0, %v4151_v0 }
  0x14   :  { %2031 = vst.msk [vmem:[%s4120_s4 + $0x78] sm:$0xff] %vm4122_vm0, %v4151_v0 }
  0x15   :  { %2065 = vst.msk [vmem:[%s4121_s5 + $0x8] sm:$0xff] %vm4122_vm0, %v4151_v0 }
  0x16   :  { %2066 = vst.msk [vmem:[%s4121_s5 + $0x10] sm:$0xff] %vm4122_vm0, %v4151_v0 }
  0x17   :  { %2067 = vst.msk [vmem:[%s4121_s5 + $0x18] sm:$0xff] %vm4122_vm0, %v4151_v0 }
  0x18   :  { %2068 = vst.msk [vmem:[%s4121_s5 + $0x20] sm:$0xff] %vm4122_vm0, %v4151_v0  ;;  %87 = vadd.xlane.f32.xlu2 %v63_v16  ;;  %85 = vadd.xlane.f32.xlu1 %v62_v17 }
  0x19   :  { %2069 = vst.msk [vmem:[%s4121_s5 + $0x28] sm:$0xff] %vm4122_vm0, %v4151_v0  ;;  %83 = vadd.xlane.f32.xlu0 %v61_v18 }
  0x1a   :  { %2070 = vst.msk [vmem:[%s4121_s5 + $0x30] sm:$0xff] %vm4122_vm0, %v4151_v0 }
  0x1b   :  { %2071 = vst.msk [vmem:[%s4121_s5 + $0x38] sm:$0xff] %vm4122_vm0, %v4151_v0 }
  0x1c   :  { %2072 = vst.msk [vmem:[%s4121_s5 + $0x40] sm:$0xff] %vm4122_vm0, %v4151_v0 }
  0x1d   :  { %2073 = vst.msk [vmem:[%s4121_s5 + $0x48] sm:$0xff] %vm4122_vm0, %v4151_v0 }
  0x1e   :  { %2074 = vst.msk [vmem:[%s4121_s5 + $0x50] sm:$0xff] %vm4122_vm0, %v4151_v0 }
  0x1f   :  { %2075 = vst.msk [vmem:[%s4121_s5 + $0x58] sm:$0xff] %vm4122_vm0, %v4151_v0 }
  0x20   :  { %2076 = vst.msk [vmem:[%s4121_s5 + $0x60] sm:$0xff] %vm4122_vm0, %v4151_v0  ;;  %93 = vadd.xlane.f32.xlu2 %v66_v22  ;;  %91 = vadd.xlane.f32.xlu1 %v65_v23 }
  0x21   :  { %2077 = vst.msk [vmem:[%s4121_s5 + $0x68] sm:$0xff] %vm4122_vm0, %v4151_v0  ;;  %89 = vadd.xlane.f32.xlu0 %v64_v24 }
  0x22   :  { %2078 = vst.msk [vmem:[%s4121_s5 + $0x70] sm:$0xff] %vm4122_vm0, %v4151_v0 }
  0x23   :  { %2079 = vst.msk [vmem:[%s4121_s5 + $0x78] sm:$0xff] %vm4122_vm0, %v4151_v0 }
  0x24   :  { %360 = vst.msk [vmem:[#allocation4] sm:$0xff] %vm4122_vm0, %v4151_v0 }
  0x25   :  { %361 = vst.msk [vmem:[#allocation4 + $0x8] sm:$0xff] %vm4122_vm0, %v4151_v0 }
  0x26   :  { %362 = vst.msk [vmem:[#allocation4 + $0x10] sm:$0xff] %vm4122_vm0, %v4151_v0 }
  0x27   :  { %363 = vst.msk [vmem:[#allocation4 + $0x18] sm:$0xff] %vm4122_vm0, %v4151_v0 }
  0x28   :  { %364 = vst.msk [vmem:[#allocation4 + $0x20] sm:$0xff] %vm4122_vm0, %v4151_v0  ;;  %99 = vadd.xlane.f32.xlu2 %v69_v28  ;;  %97 = vadd.xlane.f32.xlu1 %v68_v29 }
  0x29   :  { %365 = vst.msk [vmem:[#allocation4 + $0x28] sm:$0xff] %vm4122_vm0, %v4151_v0  ;;  %95 = vadd.xlane.f32.xlu0 %v67_v30 }
  0x2a   :  { %366 = vst.msk [vmem:[#allocation4 + $0x30] sm:$0xff] %vm4122_vm0, %v4151_v0 }
  0x2b   :  { %367 = vst.msk [vmem:[#allocation4 + $0x38] sm:$0xff] %vm4122_vm0, %v4151_v0 }
  0x2c   :  { %368 = vst.msk [vmem:[#allocation4 + $0x40] sm:$0xff] %vm4122_vm0, %v4151_v0 }
  0x2d   :  { %369 = vst.msk [vmem:[#allocation4 + $0x48] sm:$0xff] %vm4122_vm0, %v4151_v0 }
  0x2e   :  { %370 = vst.msk [vmem:[#allocation4 + $0x50] sm:$0xff] %vm4122_vm0, %v4151_v0 }
  0x2f   :  { %371 = vst.msk [vmem:[#allocation4 + $0x58] sm:$0xff] %vm4122_vm0, %v4151_v0 }
  0x30   :  { %372 = vst.msk [vmem:[#allocation4 + $0x60] sm:$0xff] %vm4122_vm0, %v4151_v0  ;;  %442 = vadd.xlane.f32.xlu2 %v425_v34  ;;  %440 = vadd.xlane.f32.xlu1 %v424_v35 }
  0x31   :  { %373 = vst.msk [vmem:[#allocation4 + $0x68] sm:$0xff] %vm4122_vm0, %v4151_v0  ;;  %101 = vadd.xlane.f32.xlu0 %v70_v36 }
  0x32   :  { %374 = vst.msk [vmem:[#allocation4 + $0x70] sm:$0xff] %vm4122_vm0, %v4151_v0 }
  0x33   :  { %375 = vst.msk [vmem:[#allocation4 + $0x78] sm:$0xff] %vm4122_vm0, %v4151_v0 }
  0x34   :  { %376 = vst.msk [vmem:[#allocation5] sm:$0xff] %vm4122_vm0, %v4151_v0 }
  0x35   :  { %377 = vst.msk [vmem:[#allocation5 + $0x8] sm:$0xff] %vm4122_vm0, %v4151_v0 }
  0x36   :  { %378 = vst.msk [vmem:[#allocation5 + $0x10] sm:$0xff] %vm4122_vm0, %v4151_v0 }
  0x37   :  { %379 = vst.msk [vmem:[#allocation5 + $0x18] sm:$0xff] %vm4122_vm0, %v4151_v0 }
  0x38   :  { %380 = vst.msk [vmem:[#allocation5 + $0x20] sm:$0xff] %vm4122_vm0, %v4151_v0  ;;  %448 = vadd.xlane.f32.xlu2 %v428_v40  ;;  %446 = vadd.xlane.f32.xlu1 %v427_v41 }
  0x39   :  { %381 = vst.msk [vmem:[#allocation5 + $0x28] sm:$0xff] %vm4122_vm0, %v4151_v0  ;;  %444 = vadd.xlane.f32.xlu0 %v426_v42 }
  0x3a   :  { %382 = vst.msk [vmem:[#allocation5 + $0x30] sm:$0xff] %vm4122_vm0, %v4151_v0 }
  0x3b   :  { %383 = vst.msk [vmem:[#allocation5 + $0x38] sm:$0xff] %vm4122_vm0, %v4151_v0 }
  0x3c   :  { %384 = vst.msk [vmem:[#allocation5 + $0x40] sm:$0xff] %vm4122_vm0, %v4151_v0 }
  0x3d   :  { %385 = vst.msk [vmem:[#allocation5 + $0x48] sm:$0xff] %vm4122_vm0, %v4151_v0 }
  0x3e   :  { %386 = vst.msk [vmem:[#allocation5 + $0x50] sm:$0xff] %vm4122_vm0, %v4151_v0 }
  0x3f   :  { %387 = vst.msk [vmem:[#allocation5 + $0x58] sm:$0xff] %vm4122_vm0, %v4151_v0 }
  0x40   :  { %388 = vst.msk [vmem:[#allocation5 + $0x60] sm:$0xff] %vm4122_vm0, %v4151_v0  ;;  %454 = vadd.xlane.f32.xlu2 %v431_v46  ;;  %452 = vadd.xlane.f32.xlu1 %v430_v47 }
  0x41   :  { %389 = vst.msk [vmem:[#allocation5 + $0x68] sm:$0xff] %vm4122_vm0, %v4151_v0  ;;  %450 = vadd.xlane.f32.xlu0 %v429_v48 }
  0x42   :  { %390 = vst.msk [vmem:[#allocation5 + $0x70] sm:$0xff] %vm4122_vm0, %v4151_v0 }
  0x43   :  { %391 = vst.msk [vmem:[#allocation5 + $0x78] sm:$0xff] %vm4122_vm0, %v4151_v0 }
  0x44   :  { %392 = vst.msk [vmem:[#allocation6] sm:$0xff] %vm4122_vm0, %v4151_v0 }
  0x45   :  { %393 = vst.msk [vmem:[#allocation6 + $0x8] sm:$0xff] %vm4122_vm0, %v4151_v0 }
  0x46   :  { %394 = vst.msk [vmem:[#allocation6 + $0x10] sm:$0xff] %vm4122_vm0, %v4151_v0 }
  0x47   :  { %395 = vst.msk [vmem:[#allocation6 + $0x18] sm:$0xff] %vm4122_vm0, %v4151_v0 }
  0x48   :  { %396 = vst.msk [vmem:[#allocation6 + $0x20] sm:$0xff] %vm4122_vm0, %v4151_v0  ;;  %460 = vadd.xlane.f32.xlu2 %v434_v52  ;;  %458 = vadd.xlane.f32.xlu1 %v433_v53 }
  0x49   :  { %397 = vst.msk [vmem:[#allocation6 + $0x28] sm:$0xff] %vm4122_vm0, %v4151_v0  ;;  %456 = vadd.xlane.f32.xlu0 %v432_v54 }
  0x4a   :  { %398 = vst.msk [vmem:[#allocation6 + $0x30] sm:$0xff] %vm4122_vm0, %v4151_v0 }
  0x4b   :  { %399 = vst.msk [vmem:[#allocation6 + $0x38] sm:$0xff] %vm4122_vm0, %v4151_v0 }
  0x4c   :  { %400 = vst.msk [vmem:[#allocation6 + $0x40] sm:$0xff] %vm4122_vm0, %v4151_v0 }
  0x4d   :  { %401 = vst.msk [vmem:[#allocation6 + $0x48] sm:$0xff] %vm4122_vm0, %v4151_v0 }
  0x4e   :  { %402 = vst.msk [vmem:[#allocation6 + $0x50] sm:$0xff] %vm4122_vm0, %v4151_v0 }
  0x4f   :  { %403 = vst.msk [vmem:[#allocation6 + $0x58] sm:$0xff] %vm4122_vm0, %v4151_v0 }
  0x50   :  { %404 = vst.msk [vmem:[#allocation6 + $0x60] sm:$0xff] %vm4122_vm0, %v4151_v0  ;;  %466 = vadd.xlane.f32.xlu2 %v437_v58  ;;  %464 = vadd.xlane.f32.xlu1 %v436_v59 }
  0x51   :  { %405 = vst.msk [vmem:[#allocation6 + $0x68] sm:$0xff] %vm4122_vm0, %v4151_v0  ;;  %462 = vadd.xlane.f32.xlu0 %v435_v60 }
  0x52   :  { %406 = vst.msk [vmem:[#allocation6 + $0x70] sm:$0xff] %vm4122_vm0, %v4151_v0 }
  0x53   :  { %407 = vst.msk [vmem:[#allocation6 + $0x78] sm:$0xff] %vm4122_vm0, %v4151_v0 }
  0x58   :  { %470 = vadd.xlane.f32.xlu1 %v439_v63 }
  0x59   :  { %468 = vadd.xlane.f32.xlu0 %v438_v4 }
  0x7b   :  { %v80_v5 = vpop.xlane.xlu2 %79  ;;  %v76_v6 = vpop.xlane.xlu1 %75 }
  0x7c   :  { %v107_v10 = vmax.f32 %v80_v5, 1e-24  ;;  %v105_v11 = vmax.f32 %v76_v6, 1e-24  ;;  %v72_v12 = vpop.xlane.xlu0 %71 }
  0x7d   :  { %v2825_v16 = vmax.f32 %v72_v12, 1e-24 }
  0x7e   :  { %2227 = vrsqrt.f32 %v107_v10  ;;  %vm165_vm1 = vweird.f32 %v107_v10  ;;  %vm145_vm3 = vweird.f32 %v105_v11 }
  0x7f   :  { %2229 = vrsqrt.f32 %v105_v11  ;;  %vm125_vm6 = vweird.f32 %v2825_v16 }
  0x80   :  { %2231 = vrsqrt.f32 %v2825_v16 }
  0x83   :  { %v82_v17 = vpop.xlane.xlu2 %81  ;;  %v78_v18 = vpop.xlane.xlu1 %77 }
  0x84   :  { %v2828_v22 = vpop.eup %2227  ;;  %v2830_v23 = vmax.f32 %v82_v17, 1e-24  ;;  %v2832_v24 = vmax.f32 %v78_v18, 1e-24  ;;  %v74_v28 = vpop.xlane.xlu0 %73 }
  0x85   :  { %v2834_v29 = vpop.eup %2229  ;;  %v160_v30 = vmul.f32 %v2828_v22, %v107_v10  ;;  %v2837_v34 = vmax.f32 %v74_v28, 1e-24  ;;  %vm166_vm2 = vweird.f32 %v2828_v22 }
  0x86   :  { %v2839_v35 = vpop.eup %2231  ;;  %v140_v36 = vmul.f32 %v2834_v29, %v105_v11  ;;  %2233 = vrsqrt.f32 %v2830_v23  ;;  %vm2856_vm4 = vmor %vm165_vm1, %vm166_vm2  ;;  %vm146_vm5 = vweird.f32 %v2834_v29  ;;  %vm175_vm8 = vweird.f32 %v2830_v23 }
  0x87   :  { %v161_v37 = vmul.f32 %v2828_v22, %v160_v30  ;;  %v120_v40 = vmul.f32 %v2839_v35, %v2825_v16  ;;  %2235 = vrsqrt.f32 %v2832_v24  ;;  %vm126_vm7 = vweird.f32 %v2839_v35  ;;  %vm2877_vm10 = vmor %vm145_vm3, %vm146_vm5 }
  0x88   :  { %v141_v41 = vmul.f32 %v2834_v29, %v140_v36  ;;  %2237 = vrsqrt.f32 %v2837_v34  ;;  %vm155_vm11 = vweird.f32 %v2832_v24  ;;  %vm135_vm13 = vweird.f32 %v2837_v34  ;;  %vm2888_vm14 = vmor %vm125_vm6, %vm126_vm7 }
  0x89   :  { %v162_v42 = vmul.f32 0.5, %v161_v37  ;;  %v121_v43 = vmul.f32 %v2839_v35, %v120_v40 }
  0x8a   :  { %v142_v44 = vmul.f32 0.5, %v141_v41 }
  0x8b   :  { %v163_v45 = vsub.f32 1.5, %v162_v42  ;;  %v122_v46 = vmul.f32 0.5, %v121_v43  ;;  %v88_v47 = vpop.xlane.xlu2 %87  ;;  %v86_v48 = vpop.xlane.xlu1 %85 }
  0x8c   :  { %v2234_v49 = vpop.eup %2233  ;;  %v143_v50 = vsub.f32 1.5, %v142_v44  ;;  %v2851_v51 = vmax.f32 %v88_v47, 1e-24  ;;  %v84_v52 = vpop.xlane.xlu0 %83  ;;  %v2866_v17 = vmax.f32 %v86_v48, 1e-24 }
  0x8d   :  { %v2236_v53 = vpop.eup %2235  ;;  %v164_v54 = vmul.f32 %v2828_v22, %v163_v45  ;;  %v123_v58 = vsub.f32 1.5, %v122_v46  ;;  %v170_v59 = vmul.f32 %v2234_v49, %v2830_v23  ;;  %vm176_vm9 = vweird.f32 %v2234_v49 }
  0x8e   :  { %v2238_v60 = vpop.eup %2237  ;;  %v150_v4 = vmul.f32 %v2236_v53, %v2832_v24  ;;  %2239 = vrsqrt.f32 %v2851_v51  ;;  %v144_v5 = vmul.f32 %v2834_v29, %v143_v50  ;;  %vm156_vm12 = vweird.f32 %v2236_v53  ;;  %vm2901_vm15 = vmor %vm175_vm8, %vm176_vm9 }
  0x8f   :  { %v171_v6 = vmul.f32 %v2234_v49, %v170_v59  ;;  %v130_v12 = vmul.f32 %v2238_v60, %v2837_v34  ;;  %v124_v10 = vmul.f32 %v2839_v35, %v123_v58  ;;  %v168_v28 = vsel %vm2856_vm4, %v2828_v22, %v164_v54  ;;  %vm157_vm2 = vmor %vm155_vm11, %vm156_vm12 }
  0x90   :  { %v151_v18 = vmul.f32 %v2236_v53, %v150_v4  ;;  %v148_v22 = vsel %vm2877_vm10, %v2834_v29, %v144_v5  ;;  %2241 = vrsqrt.f32 %v2866_v17  ;;  %v283_v46 = vmul.f32 5.0, %v168_v28 }
  0x91   :  { %v172_v30 = vmul.f32 0.5, %v171_v6  ;;  %v131_v36 = vmul.f32 %v2238_v60, %v130_v12  ;;  %v128_v47 = vsel %vm2888_vm14, %v2839_v35, %v124_v10  ;;  %v2905_v48 = vmax.f32 %v84_v52, 1e-24 }
  0x92   :  { %v152_v40 = vmul.f32 0.5, %v151_v18  ;;  %vm136_vm1 = vweird.f32 %v2238_v60  ;;  %v281_v63 = vmul.f32 5.0, %v148_v22  ;;  %v279_v23 = vmul.f32 5.0, %v128_v47 }
  0x93   :  { %v173_v11 = vsub.f32 1.5, %v172_v30  ;;  %v132_v42 = vmul.f32 0.5, %v131_v36  ;;  %v94_v43 = vpop.xlane.xlu2 %93  ;;  %v92_v44 = vpop.xlane.xlu1 %91  ;;  %2243 = vrsqrt.f32 %v2905_v48  ;;  %vm137_vm3 = vmor %vm135_vm13, %vm136_vm1  ;;  %v299_v24 = vmul.f32 %v283_v46, %v2469_v1 }
  0x94   :  { %v2893_v45 = vpop.eup %2239  ;;  %v153_v29 = vsub.f32 1.5, %v152_v40  ;;  %v90_v50 = vpop.xlane.xlu0 %89  ;;  %v2910_v35 = vmax.f32 %v94_v43, 1e-24  ;;  %v2917_v6 = vmax.f32 %v92_v44, 1e-24  ;;  %v297_v34 = vmul.f32 %v281_v63, %v2474_v2 }
  0x95   :  { %v174_v54 = vmul.f32 %v2234_v49, %v173_v11  ;;  %v133_v58 = vsub.f32 1.5, %v132_v42  ;;  %v200_v59 = vmul.f32 %v2893_v45, %v2851_v51  ;;  %v295_v40 = vmul.f32 %v279_v23, %v2479_v3 }
  0x96   :  { %v154_v4 = vmul.f32 %v2236_v53, %v153_v29  ;;  %2245 = vrsqrt.f32 %v2910_v35  ;;  %v2923_v28 = vpop.eup %2241  ;;  %v2933_v41 = vmax.f32 %v90_v50, 1e-24  ;;  %vm205_vm4 = vweird.f32 %v2851_v51 }
  0x97   :  { %v178_v5 = vsel %vm2901_vm15, %v2234_v49, %v174_v54  ;;  %v134_v52 = vmul.f32 %v2238_v60, %v133_v58  ;;  %v201_v18 = vmul.f32 %v2893_v45, %v200_v59  ;;  %2247 = vrsqrt.f32 %v2917_v6 }
  0x98   :  { %v284_v12 = vmul.f32 5.0, %v178_v5  ;;  %v158_v10 = vsel %vm157_vm2, %v2236_v53, %v154_v4  ;;  %v190_v53 = vmul.f32 %v2923_v28, %v2866_v17  ;;  %vm195_vm5 = vweird.f32 %v2866_v17 }
  0x99   :  { %v282_v30 = vmul.f32 5.0, %v158_v10  ;;  %v138_v49 = vsel %vm137_vm3, %v2238_v60, %v134_v52  ;;  %v2935_v42 = vpop.eup %2243  ;;  %2249 = vrsqrt.f32 %v2933_v41  ;;  %vm206_vm6 = vweird.f32 %v2893_v45 }
  0x9a   :  { %v300_v36 = vmul.f32 %v284_v12, %v2510_v7  ;;  %v280_v37 = vmul.f32 5.0, %v138_v49  ;;  %v202_v7 = vmul.f32 0.5, %v201_v18  ;;  %v191_v44 = vmul.f32 %v2923_v28, %v190_v53  ;;  %vm2971_vm13 = vmor %vm205_vm4, %vm206_vm6 }
  0x9b   :  { %v298_v22 = vmul.f32 %v282_v30, %v2515_v8  ;;  %v100_v11 = vpop.xlane.xlu2 %99  ;;  %v98_v60 = vpop.xlane.xlu1 %97  ;;  %v180_v2 = vmul.f32 %v2935_v42, %v2905_v48  ;;  %vm185_vm7 = vweird.f32 %v2905_v48  ;;  %vm196_vm8 = vweird.f32 %v2923_v28 }
  0x9c   :  { %v2159_v43 = vpack.c.bf16 %v300_v36, %v299_v24  ;;  %v296_v1 = vmul.f32 %v280_v37, %v2525_v9  ;;  %v96_v46 = vpop.xlane.xlu0 %95  ;;  %v2942_v3 = vmax.f32 %v100_v11, 1e-24  ;;  %v2246_v8 = vpop.eup %2245  ;;  %v192_v29 = vmul.f32 0.5, %v191_v44  ;;  %vm197_vm11 = vmor %vm195_vm5, %vm196_vm8 }
  0x9d   :  { %v2154_v47 = vpack.c.bf16 %v298_v22, %v297_v34  ;;  %v2248_v9 = vpop.eup %2247  ;;  %v181_v50 = vmul.f32 %v2935_v42, %v180_v2  ;;  %v230_v54 = vmul.f32 %v2246_v8, %v2910_v35  ;;  %v203_v58 = vsub.f32 1.5, %v202_v7 }
  0x9e   :  { %2187 = vst [vmem:[#allocation2 + $0x18] sm:$0xff] %v2159_v43   ;;  %v2149_v16 = vpack.c.bf16 %v296_v1, %v295_v40  ;;  %v193_v59 = vsub.f32 1.5, %v192_v29  ;;  %v220_v63 = vmul.f32 %v2248_v9, %v2917_v6  ;;  %vm235_vm9 = vweird.f32 %v2910_v35 }
  0x9f   :  { %2186 = vst [vmem:[#allocation2] sm:$0xff] %v2154_v47   ;;  %v182_v4 = vmul.f32 0.5, %v181_v50  ;;  %v231_v23 = vmul.f32 %v2246_v8, %v230_v54  ;;  %2251 = vrsqrt.f32 %v2942_v3  ;;  %vm186_vm10 = vweird.f32 %v2935_v42  ;;  %v2250_v36 = vpop.eup %2249 }
  0xa0   :  { %2150 = vst [vmem:[#allocation2 + $0x30] sm:$0xff] %v2149_v16   ;;  %v194_v5 = vmul.f32 %v2923_v28, %v193_v59  ;;  %v221_v52 = vmul.f32 %v2248_v9, %v220_v63  ;;  %v2956_v12 = vmax.f32 %v98_v60, 1e-24  ;;  %vm236_vm12 = vweird.f32 %v2246_v8  ;;  %vm187_vm14 = vmor %vm185_vm7, %vm186_vm10 }
  0xa1   :  { %v183_v10 = vsub.f32 1.5, %v182_v4  ;;  %v232_v18 = vmul.f32 0.5, %v231_v23  ;;  %v2960_v30 = vmax.f32 %v96_v46, 1e-24  ;;  %v204_v37 = vmul.f32 %v2893_v45, %v203_v58  ;;  %vm2986_vm15 = vmor %vm235_vm9, %vm236_vm12 }
  0xa2   :  { %v198_v17 = vsel %vm197_vm11, %v2923_v28, %v194_v5  ;;  %v222_v34 = vmul.f32 0.5, %v221_v52  ;;  %2253 = vrsqrt.f32 %v2956_v12  ;;  %v210_v51 = vmul.f32 %v2250_v36, %v2933_v41 }
  0xa3   :  { %v2962_v49 = vpop.xlane.xlu2 %442  ;;  %v2964_v24 = vpop.xlane.xlu1 %440  ;;  %v286_v22 = vmul.f32 5.0, %v198_v17  ;;  %v184_v11 = vmul.f32 %v2935_v42, %v183_v10  ;;  %v233_v60 = vsub.f32 1.5, %v232_v18  ;;  %vm226_vm1 = vweird.f32 %v2248_v9 }
  0xa4   :  { %v102_v40 = vpop.xlane.xlu0 %101  ;;  %v223_v43 = vsub.f32 1.5, %v222_v34  ;;  %2255 = vrsqrt.f32 %v2960_v30  ;;  %v211_v44 = vmul.f32 %v2250_v36, %v210_v51  ;;  %vm225_vm2 = vweird.f32 %v2917_v6 }
  0xa5   :  { %v2991_v1 = vpop.eup %2251  ;;  %v188_v7 = vsel %vm187_vm14, %v2935_v42, %v184_v11  ;;  %v234_v48 = vmul.f32 %v2246_v8, %v233_v60  ;;  %v302_v46 = vmul.f32 %v286_v22, %v2576_v14  ;;  %v208_v35 = vsel %vm2971_vm13, %v2893_v45, %v204_v37  ;;  %vm227_vm3 = vmor %vm225_vm2, %vm226_vm1 }
  0xa6   :  { %v285_v47 = vmul.f32 5.0, %v188_v7  ;;  %v224_v2 = vmul.f32 %v2248_v9, %v223_v43  ;;  %v212_v29 = vmul.f32 0.5, %v211_v44  ;;  %v260_v14 = vmul.f32 %v2991_v1, %v2942_v3 }
  0xa7   :  { %v238_v16 = vsel %vm2986_vm15, %v2246_v8, %v234_v48  ;;  %vm216_vm4 = vweird.f32 %v2250_v36  ;;  %v287_v23 = vmul.f32 5.0, %v208_v35  ;;  %vm215_vm5 = vweird.f32 %v2933_v41 }
  0xa8   :  { %v2254_v50 = vpop.eup %2253  ;;  %v301_v42 = vmul.f32 %v285_v47, %v2586_v15  ;;  %v290_v54 = vmul.f32 5.0, %v238_v16  ;;  %v228_v58 = vsel %vm227_vm3, %v2248_v9, %v224_v2  ;;  %v213_v63 = vsub.f32 1.5, %v212_v29  ;;  %vm217_vm6 = vmor %vm215_vm5, %vm216_vm4 }
  0xa9   :  { %v289_v59 = vmul.f32 5.0, %v228_v58  ;;  %v250_v6 = vmul.f32 %v2254_v50, %v2956_v12  ;;  %v261_v53 = vmul.f32 %v2991_v1, %v260_v14  ;;  %v303_v41 = vmul.f32 %v287_v23, %v2571_v13 }
  0xaa   :  { %v2256_v45 = vpop.eup %2255  ;;  %v2164_v5 = vpack.c.bf16 %v302_v46, %v301_v42  ;;  %v306_v8 = vmul.f32 %v290_v54, %v2632_v19  ;;  %v214_v10 = vmul.f32 %v2250_v36, %v213_v63  ;;  %v3014_v60 = vmax.f32 %v102_v40, 1e-24 }
  0xab   :  { %v447_v4 = vpop.xlane.xlu1 %446  ;;  %v3007_v52 = vpop.xlane.xlu2 %448  ;;  %v305_v9 = vmul.f32 %v289_v59, %v2637_v20  ;;  %v251_v18 = vmul.f32 %v2254_v50, %v250_v6  ;;  %v240_v37 = vmul.f32 %v2256_v45, %v2960_v30  ;;  %vm255_vm7 = vweird.f32 %v2956_v12 }
  0xac   :  { %v445_v15 = vpop.xlane.xlu0 %444  ;;  %2188 = vst [vmem:[#allocation2 + $0x10] sm:$0xff] %v2164_v5   ;;  %v218_v34 = vsel %vm217_vm6, %v2250_v36, %v214_v10  ;;  %vm256_vm8 = vweird.f32 %v2254_v50  ;;  %v3019_v43 = vmax.f32 %v2962_v49, 1e-24  ;;  %v3022_v36 = vmax.f32 %v2964_v24, 1e-24 }
  0xad   :  { %v2174_v17 = vpack.c.bf16 %v306_v8, %v305_v9  ;;  %v252_v22 = vmul.f32 0.5, %v251_v18  ;;  %v241_v19 = vmul.f32 %v2256_v45, %v240_v37  ;;  %v288_v11 = vmul.f32 5.0, %v218_v34  ;;  %vm257_vm10 = vmor %vm255_vm7, %vm256_vm8 }
  0xae   :  { %2257 = vrsqrt.f32 %v3014_v60  ;;  %v262_v13 = vmul.f32 0.5, %v261_v53  ;;  %vm246_vm9 = vweird.f32 %v2256_v45  ;;  %vm245_vm11 = vweird.f32 %v2960_v30 }
  0xaf   :  { %2190 = vst [vmem:[#allocation2 + $0x20] sm:$0xff] %v2174_v17   ;;  %v253_v20 = vsub.f32 1.5, %v252_v22  ;;  %v242_v51 = vmul.f32 0.5, %v241_v19  ;;  %v304_v28 = vmul.f32 %v288_v11, %v2647_v21  ;;  %vm247_vm12 = vmor %vm245_vm11, %vm246_vm9  ;;  %2259 = vrsqrt.f32 %v3019_v43 }
  0xb0   :  { %v475_v24 = vmax.f32 %v447_v4, 1e-24  ;;  %v263_v2 = vsub.f32 1.5, %v262_v13  ;;  %2261 = vrsqrt.f32 %v3022_v36  ;;  %v474_v16 = vmax.f32 %v445_v15, 1e-24 }
  0xb1   :  { %v254_v7 = vmul.f32 %v2254_v50, %v253_v20  ;;  %v243_v40 = vsub.f32 1.5, %v242_v51  ;;  %v2169_v48 = vpack.c.bf16 %v304_v28, %v303_v41  ;;  %vm265_vm13 = vweird.f32 %v2942_v3 }
  0xb2   :  { %2263 = vrsqrt.f32 %v475_v24  ;;  %vm266_vm14 = vweird.f32 %v2991_v1  ;;  %v264_v58 = vmul.f32 %v2991_v1, %v263_v2  ;;  %vm275_vm2 = vweird.f32 %v3014_v60 }
  0xb3   :  { %v258_v44 = vsel %vm257_vm10, %v2254_v50, %v254_v7  ;;  %v244_v12 = vmul.f32 %v2256_v45, %v243_v40  ;;  %v3026_v46 = vpop.xlane.xlu1 %452  ;;  %2189 = vst [vmem:[#allocation2 + $0x8] sm:$0xff] %v2169_v48   ;;  %v3031_v47 = vpop.xlane.xlu2 %454  ;;  %2265 = vrsqrt.f32 %v474_v16  ;;  %vm3042_vm15 = vmor %vm265_vm13, %vm266_vm14  ;;  %vm524_vm5 = vweird.f32 %v475_v24 }
  0xb4   :  { %v3028_v21 = vpop.xlane.xlu0 %450  ;;  %v292_v49 = vmul.f32 5.0, %v258_v44  ;;  %v2258_v29 = vpop.eup %2257  ;;  %vm514_vm8 = vweird.f32 %v474_v16  ;;  %vm504_vm10 = vweird.f32 %v3019_v43  ;;  %vm494_vm14 = vweird.f32 %v3022_v36 }
  0xb5   :  { %v248_v35 = vsel %vm247_vm12, %v2256_v45, %v244_v12  ;;  %v270_v42 = vmul.f32 %v2258_v29, %v3014_v60  ;;  %v3040_v59 = vpop.eup %2259  ;;  %vm276_vm1 = vweird.f32 %v2258_v29 }
  0xb6   :  { %v308_v30 = vmul.f32 %v292_v49, %v2683_v26  ;;  %v291_v50 = vmul.f32 5.0, %v248_v35  ;;  %v3046_v6 = vpop.eup %2261  ;;  %v499_v10 = vmul.f32 %v3040_v59, %v3019_v43  ;;  %vm277_vm3 = vmor %vm275_vm2, %vm276_vm1  ;;  %vm505_vm11 = vweird.f32 %v3040_v59 }
  0xb7   :  { %v271_v14 = vmul.f32 %v2258_v29, %v270_v42  ;;  %v489_v18 = vmul.f32 %v3046_v6, %v3022_v36  ;;  %vm495_vm12 = vweird.f32 %v3046_v6  ;;  %vm3078_vm13 = vmor %vm504_vm10, %vm505_vm11 }
  0xb8   :  { %v307_v54 = vmul.f32 %v291_v50, %v2690_v27  ;;  %v2264_v4 = vpop.eup %2263  ;;  %v268_v27 = vsel %vm3042_vm15, %v2991_v1, %v264_v58  ;;  %v500_v11 = vmul.f32 %v3040_v59, %v499_v10  ;;  %vm496_vm15 = vmor %vm494_vm14, %vm495_vm12 }
  0xb9   :  { %v272_v3 = vmul.f32 0.5, %v271_v14  ;;  %v519_v23 = vmul.f32 %v2264_v4, %v475_v24  ;;  %v2266_v15 = vpop.eup %2265  ;;  %v293_v1 = vmul.f32 5.0, %v268_v27  ;;  %v490_v60 = vmul.f32 %v3046_v6, %v489_v18  ;;  %v858_v27 = vld [vmem:[%s4116_s0] sm:$0xff] }
  0xba   :  { %v2179_v26 = vpack.c.bf16 %v308_v30, %v307_v54  ;;  %v509_v17 = vmul.f32 %v2266_v15, %v474_v16  ;;  %vm525_vm4 = vweird.f32 %v2264_v4  ;;  %vm515_vm7 = vweird.f32 %v2266_v15 }
  0xbb   :  { %v273_v45 = vsub.f32 1.5, %v272_v3  ;;  %v3051_v5 = vpop.xlane.xlu1 %458  ;;  %v461_v9 = vpop.xlane.xlu2 %460  ;;  %v520_v53 = vmul.f32 %v2264_v4, %v519_v23  ;;  %v309_v51 = vmul.f32 %v293_v1, %v2678_v25  ;;  %vm526_vm6 = vmor %vm524_vm5, %vm525_vm4  ;;  %v501_v44 = vmul.f32 0.5, %v500_v11 }
  0xbc   :  { %2191 = vst [vmem:[#allocation2 + $0x28] sm:$0xff] %v2179_v26   ;;  %v3053_v8 = vpop.xlane.xlu0 %456  ;;  %v510_v41 = vmul.f32 %v2266_v15, %v509_v17  ;;  %v491_v12 = vmul.f32 0.5, %v490_v60  ;;  %vm516_vm9 = vmor %vm514_vm8, %vm515_vm7  ;;  %v3102_v10 = vmax.f32 %v461_v9, 1e-24  ;;  %v859_v9 = vld [vmem:[%s4116_s0 + $0x8] sm:$0xff] }
  0xbd   :  { %v274_v37 = vmul.f32 %v2258_v29, %v273_v45  ;;  %v521_v22 = vmul.f32 0.5, %v520_v53  ;;  %v502_v50 = vsub.f32 1.5, %v501_v44  ;;  %v860_v45 = vld [vmem:[%s4116_s0 + $0x10] sm:$0xff]  ;;  %v3125_v17 = vmax.f32 %v3053_v8, 1e-24 }
  0xbe   :  { %v511_v13 = vmul.f32 0.5, %v510_v41  ;;  %v492_v42 = vsub.f32 1.5, %v491_v12 }
  0xbf   :  { %v278_v34 = vsel %vm277_vm3, %v2258_v29, %v274_v37  ;;  %v522_v20 = vsub.f32 1.5, %v521_v22  ;;  %v503_v16 = vmul.f32 %v3040_v59, %v502_v50  ;;  %v863_v22 = vld [vmem:[%s4116_s0 + $0x28] sm:$0xff] }
  0xc0   :  { %v294_v19 = vmul.f32 5.0, %v278_v34  ;;  %v512_v48 = vsub.f32 1.5, %v511_v13  ;;  %v493_v63 = vmul.f32 %v3046_v6, %v492_v42  ;;  %v861_v34 = vld [vmem:[%s4116_s0 + $0x18] sm:$0xff]  ;;  %v3144_v13 = vmax.f32 %v3031_v47, 1e-24  ;;  %v862_v47 = vld [vmem:[%s4116_s0 + $0x20] sm:$0xff] }
  0xc1   :  { %v523_v7 = vmul.f32 %v2264_v4, %v522_v20  ;;  %v507_v26 = vsel %vm3078_vm13, %v3040_v59, %v503_v16  ;;  %v2396_v59 = vmov 0   ;;  %vm594_vm13 = vweird.f32 %v3102_v10 }
  0xc2   :  { %v310_v28 = vmul.f32 %v294_v19, %v2721_v33  ;;  %v513_v29 = vmul.f32 %v2266_v15, %v512_v48  ;;  %v497_v3 = vsel %vm496_vm15, %v3046_v6, %v493_v63  ;;  %2225 = vset.pattern.permute.xlu1 %v2396_v59  ;;  %2223 = vset.pattern.permute.xlu2 %v2396_v59 }
  0xc3   :  { %v527_v49 = vsel %vm526_vm6, %v2264_v4, %v523_v7  ;;  %v465_v2 = vpop.xlane.xlu1 %464  ;;  %v467_v30 = vpop.xlane.xlu2 %466  ;;  %v649_v18 = vmul.f32 %v507_v26, %v2712_v31  ;;  %v648_v37 = vmul.f32 %v497_v3, %v2714_v32  ;;  %876 = vperm.xlu2 %2223, %v858_v27   ;;  %882 = vperm.xlu1 %2225, %v860_v45   ;;  %v3120_v32 = vmax.f32 %v3051_v5, 1e-24 }
  0xc4   :  { %v2184_v40 = vpack.c.bf16 %v310_v28, %v309_v51  ;;  %v463_v35 = vpop.xlane.xlu0 %462  ;;  %v651_v25 = vmul.f32 %v527_v49, %v2743_v38  ;;  %v517_v33 = vsel %vm516_vm9, %v2266_v15, %v513_v29  ;;  %v3066_v54 = vmax.f32 %v467_v30, 1e-24  ;;  %2224 = vset.pattern.permute.xlu0 %v2396_v59  ;;  %v865_v30 = vld [vmem:[%s4116_s0 + $0x38] sm:$0xff] }
  0xc5   :  { %v650_v24 = vmul.f32 %v517_v33, %v2747_v39  ;;  %v3070_v58 = vmax.f32 %v465_v2, 1e-24  ;;  %v3088_v4 = vmax.f32 %v463_v35, 1e-24  ;;  %879 = vperm.xlu0 %2224, %v859_v9   ;;  %v3122_v1 = vpack.c.bf16 %v649_v18, %v648_v37 }
  0xc6   :  { %2192 = vst [vmem:[#allocation2 + $0x38] sm:$0xff] %v2184_v40   ;;  %2267 = vrsqrt.f32 %v3066_v54  ;;  %v3149_v49 = vmax.f32 %v3026_v46, 1e-24  ;;  %vm624_vm4 = vweird.f32 %v3066_v54  ;;  %v3196_v9 = vmax.f32 %v3028_v21, 1e-24 }
  0xc7   :  { %v3072_v14 = vpack.c.bf16 %v651_v25, %v650_v24  ;;  %2269 = vrsqrt.f32 %v3070_v58  ;;  %vm614_vm11 = vweird.f32 %v3070_v58 }
  0xcb   :  { %v471_v39 = vpop.xlane.xlu1 %470  ;;  %885 = vperm.xlu2 %2223, %v861_v34   ;;  %891 = vperm.xlu1 %2225, %v863_v22  }
  0xcc   :  { %v469_v43 = vpop.xlane.xlu0 %468  ;;  %v3096_v36 = vmax.f32 %v471_v39, 1e-24  ;;  %v3100_v15 = vpop.eup %2267 }
  0xcd   :  { %v3098_v23 = vmax.f32 %v469_v43, 1e-24  ;;  %v3104_v6 = vpop.eup %2269  ;;  %v619_v53 = vmul.f32 %v3100_v15, %v3066_v54  ;;  %vm625_vm6 = vweird.f32 %v3100_v15  ;;  %v866_v43 = vld [vmem:[%s4116_s0 + $0x40] sm:$0xff] }
  0xce   :  { %2271 = vrsqrt.f32 %v3096_v36  ;;  %v609_v31 = vmul.f32 %v3104_v6, %v3070_v58  ;;  %vm644_vm2 = vweird.f32 %v3096_v36  ;;  %vm615_vm8 = vweird.f32 %v3104_v6  ;;  %900 = vperm.xlu0 %2224, %v866_v43   ;;  %vm3190_vm10 = vmor %vm624_vm4, %vm625_vm6  ;;  %v2359_v43 = vld [vmem:[#allocation7 + $0x50] sm:$0xff] }
  0xcf   :  { %2273 = vrsqrt.f32 %v3088_v4  ;;  %v620_v41 = vmul.f32 %v3100_v15, %v619_v53  ;;  %vm634_vm7 = vweird.f32 %v3098_v23  ;;  %vm3204_vm12 = vmor %vm614_vm11, %vm615_vm8  ;;  %vm584_vm6 = vweird.f32 %v3120_v32 }
  0xd0   :  { %2275 = vrsqrt.f32 %v3098_v23  ;;  %v610_v5 = vmul.f32 %v3104_v6, %v609_v31  ;;  %vm574_vm8 = vweird.f32 %v3125_v17 }
  0xd1   :  { %2277 = vrsqrt.f32 %v3102_v10  ;;  %v621_v7 = vmul.f32 0.5, %v620_v41  ;;  %v864_v41 = vld [vmem:[%s4116_s0 + $0x30] sm:$0xff] }
  0xd2   :  { %2279 = vrsqrt.f32 %v3120_v32  ;;  %v611_v48 = vmul.f32 0.5, %v610_v5  ;;  %v868_v5 = vld [vmem:[%s4116_s0 + $0x50] sm:$0xff] }
  0xd3   :  { %2281 = vrsqrt.f32 %v3125_v17  ;;  %v622_v46 = vsub.f32 1.5, %v621_v7  ;;  %888 = vperm.xlu2 %2223, %v862_v47   ;;  %897 = vperm.xlu1 %2225, %v865_v30  }
  0xd4   :  { %v2272_v19 = vpop.eup %2271  ;;  %2283 = vrsqrt.f32 %v3144_v13  ;;  %v612_v42 = vsub.f32 1.5, %v611_v48 }
  0xd5   :  { %v3134_v11 = vpop.eup %2273  ;;  %v639_v60 = vmul.f32 %v2272_v19, %v3096_v36  ;;  %vm645_vm1 = vweird.f32 %v2272_v19  ;;  %2285 = vrsqrt.f32 %v3149_v49  ;;  %v623_v45 = vmul.f32 %v3100_v15, %v622_v46  ;;  %v871_v46 = vld [vmem:[%s4116_s0 + $0x68] sm:$0xff] }
  0xd6   :  { %v2276_v20 = vpop.eup %2275  ;;  %v599_v40 = vmul.f32 %v3134_v11, %v3088_v4  ;;  %vm646_vm5 = vmor %vm644_vm2, %vm645_vm1  ;;  %v613_v36 = vmul.f32 %v3104_v6, %v612_v42  ;;  %2287 = vrsqrt.f32 %v3196_v9  ;;  %vm605_vm15 = vweird.f32 %v3134_v11 }
  0xd7   :  { %v3139_v8 = vpop.eup %2277  ;;  %v640_v51 = vmul.f32 %v2272_v19, %v639_v60  ;;  %v629_v28 = vmul.f32 %v2276_v20, %v3098_v23  ;;  %vm635_vm3 = vweird.f32 %v2276_v20  ;;  %v3222_v60 = vmax.f32 %v3007_v52, 1e-24 }
  0xd8   :  { %v589_v2 = vmul.f32 %v3139_v8, %v3102_v10  ;;  %v3159_v25 = vpop.eup %2279  ;;  %v600_v33 = vmul.f32 %v3134_v11, %v599_v40  ;;  %vm636_vm9 = vmor %vm634_vm7, %vm635_vm3  ;;  %v617_v21 = vsel %vm3204_vm12, %v3104_v6, %v613_v36  ;;  %vm595_vm14 = vweird.f32 %v3139_v8 }
  0xd9   :  { %v641_v44 = vmul.f32 0.5, %v640_v51  ;;  %v630_v12 = vmul.f32 %v2276_v20, %v629_v28  ;;  %v3164_v50 = vpop.eup %2281  ;;  %v579_v26 = vmul.f32 %v3159_v25, %v3120_v32  ;;  %v660_v28 = vmul.f32 %v617_v21, %v2801_v56  ;;  %vm3242_vm1 = vmor %vm594_vm13, %vm595_vm14 }
  0xda   :  { %v590_v63 = vmul.f32 %v3139_v8, %v589_v2  ;;  %v569_v3 = vmul.f32 %v3164_v50, %v3125_v17  ;;  %v601_v23 = vmul.f32 0.5, %v600_v33  ;;  %v3184_v18 = vpop.eup %2283  ;;  %2289 = vrsqrt.f32 %v3222_v60  ;;  %v870_v17 = vld [vmem:[%s4116_s0 + $0x60] sm:$0xff] }
  0xdb   :  { %v642_v35 = vsub.f32 1.5, %v641_v44  ;;  %v631_v29 = vmul.f32 0.5, %v630_v12  ;;  %v3199_v31 = vpop.eup %2285  ;;  %v580_v34 = vmul.f32 %v3159_v25, %v579_v26  ;;  %894 = vperm.xlu2 %2223, %v864_v41   ;;  %906 = vperm.xlu1 %2225, %v868_v5   ;;  %vm604_vm2 = vweird.f32 %v3088_v4  ;;  %v867_v4 = vld [vmem:[%s4116_s0 + $0x48] sm:$0xff]  ;;  %v2365_v12 = vld [vmem:[#allocation7 + $0x20] sm:$0xff] }
  0xdc   :  { %v591_v53 = vmul.f32 0.5, %v590_v63  ;;  %v602_v58 = vsub.f32 1.5, %v601_v23  ;;  %v549_v52 = vmul.f32 %v3199_v31, %v3149_v49  ;;  %vm3248_vm3 = vmor %vm604_vm2, %vm605_vm15  ;;  %vm585_vm4 = vweird.f32 %v3159_v25 }
  0xdd   :  { %v643_v24 = vmul.f32 %v2272_v19, %v642_v35  ;;  %v632_v16 = vsub.f32 1.5, %v631_v29  ;;  %v581_v7 = vmul.f32 0.5, %v580_v34  ;;  %v3252_v35 = vpop.eup %2287  ;;  %vm3282_vm7 = vmor %vm584_vm6, %vm585_vm4  ;;  %vm565_vm11 = vweird.f32 %v3184_v18  ;;  %v2361_v34 = vld [vmem:[#allocation7 + $0x40] sm:$0xff] }
  0xde   :  { %v592_v6 = vsub.f32 1.5, %v591_v53  ;;  %v603_v48 = vmul.f32 %v3134_v11, %v602_v58  ;;  %v550_v29 = vmul.f32 %v3199_v31, %v549_v52  ;;  %v2360_v53 = vld [vmem:[#allocation7 + $0x48] sm:$0xff]  ;;  %vm555_vm12 = vweird.f32 %v3199_v31  ;;  %v2363_v52 = vld [vmem:[#allocation7 + $0x30] sm:$0xff] }
  0xdf   :  { %v647_v38 = vsel %vm646_vm5, %v2272_v19, %v643_v24  ;;  %v633_v39 = vmul.f32 %v2276_v20, %v632_v16  ;;  %v570_v19 = vmul.f32 %v3164_v50, %v569_v3  ;;  %v582_v47 = vsub.f32 1.5, %v581_v7 }
  0xe0   :  { %v663_v27 = vmul.f32 %v647_v38, %v2817_v61  ;;  %v593_v44 = vmul.f32 %v3139_v8, %v592_v6  ;;  %v607_v10 = vsel %vm3248_vm3, %v3134_v11, %v603_v48  ;;  %v872_v11 = vld [vmem:[%s4116_s0 + $0x70] sm:$0xff]  ;;  %v3270_v42 = vpop.eup %2289  ;;  %v539_v16 = vmul.f32 %v3252_v35, %v3196_v9  ;;  %v873_v6 = vld [vmem:[%s4116_s0 + $0x78] sm:$0xff]  ;;  %v2364_v48 = vld [vmem:[#allocation7 + $0x28] sm:$0xff] }
  0xe1   :  { %v637_v59 = vsel %vm636_vm9, %v2276_v20, %v633_v39  ;;  %v869_v20 = vld [vmem:[%s4116_s0 + $0x58] sm:$0xff]  ;;  %v571_v40 = vmul.f32 0.5, %v570_v19  ;;  %v659_v63 = vmul.f32 %v607_v10, %v2805_v57  ;;  %v551_v38 = vmul.f32 0.5, %v550_v29  ;;  %v2142_v29 = vld [vmem:[#allocation2 + $0x8] sm:$0xff] }
  0xe2   :  { %v662_v61 = vmul.f32 %v637_v59, %v2819_v62  ;;  %v627_v62 = vsel %vm3190_vm10, %v3100_v15, %v623_v45  ;;  %v559_v15 = vmul.f32 %v3184_v18, %v3144_v13  ;;  %909 = vperm.xlu0 %2224, %v869_v20   ;;  %v597_v33 = vsel %vm3242_vm1, %v3139_v8, %v593_v44  ;;  %v2362_v20 = vld [vmem:[#allocation7 + $0x38] sm:$0xff] }
  0xe3   :  { %v661_v51 = vmul.f32 %v627_v62, %v2799_v55  ;;  %v572_v30 = vsub.f32 1.5, %v571_v40  ;;  %903 = vperm.xlu2 %2223, %v867_v4   ;;  %915 = vperm.xlu1 %2225, %v871_v46   ;;  %v583_v8 = vmul.f32 %v3159_v25, %v582_v47  ;;  %vm575_vm5 = vweird.f32 %v3164_v50  ;;  %v2144_v47 = vld [vmem:[#allocation2 + $0x28] sm:$0xff] }
  0xe4   :  { %v671_v22 = vpack.c.bf16 %v663_v27, %v662_v61  ;;  %v560_v55 = vmul.f32 %v3184_v18, %v559_v15  ;;  %v658_v26 = vmul.f32 %v2359_v43, %v597_v33  ;;  %v529_v3 = vmul.f32 %v3270_v42, %v3222_v60  ;;  %vm3287_vm9 = vmor %vm574_vm8, %vm575_vm5  ;;  %v2145_v43 = vld [vmem:[#allocation2 + $0x38] sm:$0xff] }
  0xe5   :  { %v670_v2 = vpack.c.bf16 %v661_v51, %v660_v28  ;;  %v573_v39 = vmul.f32 %v3164_v50, %v572_v30  ;;  %v552_v23 = vsub.f32 1.5, %v551_v38  ;;  %v540_v59 = vmul.f32 %v3252_v35, %v539_v16  ;;  %v3344_v30 = vld [vmem:[%s4117_s1] ss:$0 sm:$0xff]  ;;  %v2141_v38 = vld [vmem:[#allocation2 + $0x10] sm:$0xff] }
  0xe6   :  { %736 = vmatpush.bf16.xpose.msra.mxu0 %v671_v22  ;;  %2193 = vmatpush.bf16.xpose.msra.mxu1 %v671_v22  ;;  %v561_v24 = vmul.f32 0.5, %v560_v55  ;;  %v669_v36 = vpack.c.bf16 %v659_v63, %v658_v26  ;;  %v587_v32 = vsel %vm3282_vm7, %v3159_v25, %v583_v8  ;;  %v530_v61 = vmul.f32 %v3270_v42, %v529_v3  ;;  %v2139_v63 = vld [vmem:[#allocation2] sm:$0xff] }
  0xe7   :  { %2194 = vmatpush.bf16.xpose.msra.mxu2 %v671_v22  ;;  %2195 = vmatpush.bf16.xpose.msra.mxu3 %v671_v22  ;;  %v577_v37 = vsel %vm3287_vm9, %v3164_v50, %v573_v39  ;;  %vm564_vm10 = vweird.f32 %v3144_v13  ;;  %v657_v25 = vmul.f32 %v2360_v53, %v587_v32  ;;  %v553_v22 = vmul.f32 %v3199_v31, %v552_v23  ;;  %v2143_v39 = vld [vmem:[#allocation2 + $0x20] sm:$0xff] }
  0xe8   :  { %v562_v57 = vsub.f32 1.5, %v561_v24  ;;  %v656_v54 = vmul.f32 %v2361_v34, %v577_v37  ;;  %v541_v19 = vmul.f32 0.5, %v540_v59  ;;  %vm3307_vm13 = vmor %vm564_vm10, %vm565_vm11  ;;  %v531_v13 = vmul.f32 0.5, %v530_v61 }
  0xe9   :  { %vm554_vm14 = vweird.f32 %v3149_v49  ;;  %vm534_vm1 = vweird.f32 %v3222_v60  ;;  %vm535_vm2 = vweird.f32 %v3270_v42  ;;  %vm545_vm3 = vweird.f32 %v3252_v35 }
  0xea   :  { %918 = vperm.xlu0 %2224, %v872_v11   ;;  %v563_v50 = vmul.f32 %v3184_v18, %v562_v57  ;;  %vm3312_vm15 = vmor %vm554_vm14, %vm555_vm12  ;;  %v668_v58 = vpack.c.bf16 %v657_v25, %v656_v54  ;;  %v542_v15 = vsub.f32 1.5, %v541_v19  ;;  %v532_v49 = vsub.f32 1.5, %v531_v13 }
  0xeb   :  { %912 = vperm.xlu2 %2223, %v870_v17   ;;  %v557_v5 = vsel %vm3312_vm15, %v3199_v31, %v553_v22  ;;  %vm536_vm4 = vmor %vm534_vm1, %vm535_vm2  ;;  %vm544_vm5 = vweird.f32 %v3196_v9  ;;  %v2138_v9 = vld [vmem:[#allocation2 + $0x30] sm:$0xff]  ;;  %v4207_v16 = vmov 0  ;;  %v4209_v45 = vmov 0 }
  0xec   :  { %v567_v41 = vsel %vm3307_vm13, %v3184_v18, %v563_v50  ;;  %v654_v51 = vmul.f32 %v2363_v52, %v557_v5  ;;  %v543_v31 = vmul.f32 %v3252_v35, %v542_v15  ;;  %v533_v28 = vmul.f32 %v3270_v42, %v532_v49  ;;  %vm546_vm6 = vmor %vm544_vm5, %vm545_vm3  ;;  %v1421_v49 = vld [vmem:[#allocation6] sm:$0xff] }
  0xed   :  { %v655_v18 = vmul.f32 %v2362_v20, %v567_v41  ;;  %v4211_v59 = vmov 0  ;;  %v4213_v37 = vmov 0  ;;  %v4215_v25 = vmov 0 }
  0xee   :  { %737 = vmatpush.bf16.xpose.msra.mxu0 %v670_v2  ;;  %2196 = vmatpush.bf16.xpose.msra.mxu1 %v670_v2  ;;  %v547_v60 = vsel %vm546_vm6, %v3252_v35, %v543_v31  ;;  %v537_v40 = vsel %vm536_vm4, %v3270_v42, %v533_v28  ;;  %v786_v35 = vlaneseq  ;;  %v4205_v42 = vmov 0 }
  0xef   :  { %2197 = vmatpush.bf16.xpose.msra.mxu2 %v670_v2  ;;  %2198 = vmatpush.bf16.xpose.msra.mxu3 %v670_v2  ;;  %v667_v7 = vpack.c.bf16 %v655_v18, %v654_v51  ;;  %v653_v44 = vmul.f32 %v2364_v48, %v547_v60  ;;  %v652_v55 = vmul.f32 %v2365_v12, %v537_v40  ;;  %v2140_v2 = vld [vmem:[#allocation2 + $0x18] sm:$0xff]  ;;  %v4217_v54 = vmov 0 }
  0xf0   :  { %v3348_v10 = vand.u32 127, %v786_v35  ;;  %v4219_v22 = vmov 0  ;;  %v4223_v13 = vmov 0  ;;  %v4231_v52 = vmov 0 }
  0xf1   :  { %v666_v56 = vpack.c.bf16 %v653_v44, %v652_v55  ;;  %v4234_v28 = vmov 0  ;;  %v4242_v12 = vmov 0 }
  0xf2   :  { %vm4127_vm7 = vcmp.lt.s32.totalorder %v3348_v10, 8 }
  0xf3   :  { %921 = vperm.xlu2 %2223, %v873_v6  }
  0xf6   :  { %738 = vmatpush.bf16.xpose.msra.mxu0 %v669_v36  ;;  %2199 = vmatpush.bf16.xpose.msra.mxu1 %v669_v36 }
  0xf7   :  { %2200 = vmatpush.bf16.xpose.msra.mxu2 %v669_v36  ;;  %2201 = vmatpush.bf16.xpose.msra.mxu3 %v669_v36 }
  0xfe   :  { %739 = vmatpush.bf16.xpose.msra.mxu0 %v668_v58  ;;  %2202 = vmatpush.bf16.xpose.msra.mxu1 %v668_v58 }
  0xff   :  { %2203 = vmatpush.bf16.xpose.msra.mxu2 %v668_v58  ;;  %2204 = vmatpush.bf16.xpose.msra.mxu3 %v668_v58  ;;  %v4225_v58 = vmov 0 }
 0x106   :  { %740 = vmatpush.bf16.xpose.msra.mxu0 %v667_v7  ;;  %2205 = vmatpush.bf16.xpose.msra.mxu1 %v667_v7 }
 0x107   :  { %2206 = vmatpush.bf16.xpose.msra.mxu2 %v667_v7  ;;  %2207 = vmatpush.bf16.xpose.msra.mxu3 %v667_v7 }
 0x10e   :  { %741 = vmatpush.bf16.xpose.msra.mxu0 %v666_v56  ;;  %2208 = vmatpush.bf16.xpose.msra.mxu1 %v666_v56 }
 0x10f   :  { %2209 = vmatpush.bf16.xpose.msra.mxu2 %v666_v56  ;;  %2210 = vmatpush.bf16.xpose.msra.mxu3 %v666_v56 }
 0x116   :  { %742 = vmatpush.bf16.xpose.msra.mxu0 %v3072_v14  ;;  %2211 = vmatpush.bf16.xpose.msra.mxu1 %v3072_v14 }
 0x117   :  { %2212 = vmatpush.bf16.xpose.msra.mxu2 %v3072_v14  ;;  %2213 = vmatpush.bf16.xpose.msra.mxu3 %v3072_v14  ;;  %v3346_v14 = vshrl.u32 %v786_v35, 7 }
 0x119   :  { %vm826_vm8 = vcmp.ne.s32.totalorder %v3346_v14, %v3348_v10  ;;  %v790_v46 = vadd.s32 24, %v3346_v14  ;;  %v789_v3 = vadd.s32 16, %v3346_v14  ;;  %v793_v27 = vadd.s32 48, %v3346_v14 }
 0x11a   :  { %vm3355_vm9 = vmand %vm4127_vm7, %vm826_vm8  ;;  %v788_v57 = vadd.s32 8, %v3346_v14  ;;  %v791_v36 = vadd.s32 32, %v3346_v14  ;;  %v792_v32 = vadd.s32 40, %v3346_v14  ;;  %v796_v17 = vadd.s32 72, %v3346_v14 }
 0x11b   :  { %vm829_vm12 = vcmp.ne.s32.totalorder %v790_v46, %v3348_v10  ;;  %vm828_vm1 = vcmp.ne.s32.totalorder %v789_v3, %v3348_v10  ;;  %vm832_vm2 = vcmp.ne.s32.totalorder %v793_v27, %v3348_v10  ;;  %v794_v41 = vadd.s32 56, %v3346_v14 }
 0x11c   :  { %vm3373_vm13 = vmand %vm4127_vm7, %vm829_vm12  ;;  %vm827_vm3 = vcmp.ne.s32.totalorder %v788_v57, %v3348_v10  ;;  %vm835_vm0 = vcmp.ne.s32.totalorder %v796_v17, %v3348_v10  ;;  %v799_v15 = vadd.s32 96, %v3346_v14  ;;  %v795_v20 = vadd.s32 64, %v3346_v14 }
 0x11d   :  { %v4206_v42 = vsel %vm3373_vm13, 4294967295, %v4205_v42  ;;  %vm3395_vm4 = vmand %vm4127_vm7, %vm828_vm1  ;;  %vm830_vm1 = vcmp.ne.s32.totalorder %v791_v36, %v3348_v10  ;;  %v797_v55 = vadd.s32 80, %v3346_v14  ;;  %v798_v56 = vadd.s32 88, %v3346_v14 }
 0x11e   :  { %743 = vmatpush.bf16.xpose.msra.mxu0 %v3122_v1  ;;  %2214 = vmatpush.bf16.xpose.msra.mxu1 %v3122_v1  ;;  %v4210_v45 = vsel %vm3395_vm4, 4294967295, %v4209_v45  ;;  %vm3402_vm5 = vmand %vm4127_vm7, %vm832_vm2 }
 0x11f   :  { %2215 = vmatpush.bf16.xpose.msra.mxu2 %v3122_v1  ;;  %2216 = vmatpush.bf16.xpose.msra.mxu3 %v3122_v1  ;;  %v877_v1 = vpop.permute.xlu2 %876  ;;  %v4212_v59 = vsel %vm3402_vm5, 4294967295, %v4211_v59  ;;  %vm3410_vm8 = vmand %vm4127_vm7, %vm827_vm3  ;;  %vm831_vm3 = vcmp.ne.s32.totalorder %v792_v32, %v3348_v10 }
 0x120   :  { %vm924_vm10 = vcmp.eq.s32.totalorder %v877_v1, %v3344_v30  ;;  %v4214_v37 = vsel %vm3410_vm8, 4294967295, %v4213_v37  ;;  %v4249_v1 = vmov 0 }
 0x121   :  { %vm3363_vm11 = vmand %vm3355_vm9, %vm924_vm10 }
 0x122   :  { %v2121_v11 = vsel %vm3363_vm11, 1.0, %v4151_v0 }
 0x123   :  { %1469 = vadd.xlane.f32.xlu2 %v2121_v11 }
 0x125   :  { %744 = vmatmul.bf16.vlgmr.msra.gmra.mxu0 %v2138_v9  ;;  %754 = vmatmul.bf16.vlgmr.msra.gmra.mxu1 %v2140_v2 }
 0x126   :  { %764 = vmatmul.bf16.vlgmr.msra.gmra.mxu2 %v2142_v29  ;;  %774 = vmatmul.bf16.vlgmr.msra.gmra.mxu3 %v2144_v47 }
 0x127   :  { %v886_v24 = vpop.permute.xlu2 %885 }
 0x128   :  { %vm927_vm14 = vcmp.eq.s32.totalorder %v886_v24, %v3344_v30 }
 0x129   :  { %vm3380_vm15 = vmand %vm3373_vm13, %vm927_vm14 }
 0x12a   :  { %v4208_v16 = vsel %vm3380_vm15, 4294967295, %v4207_v16  ;;  %v2124_v8 = vsel %vm3380_vm15, 1.0, %v4151_v0  ;;  %vm3450_vm15 = vmand %vm4127_vm7, %vm830_vm1 }
 0x12b   :  { %1475 = vadd.xlane.f32.xlu0 %v2124_v8  ;;  %vm3462_vm13 = vmand %vm4127_vm7, %vm835_vm0 }
 0x12c   :  { %v4226_v58 = vsel %vm3462_vm13, 4294967295, %v4225_v58 }
 0x12f   :  { %v889_v26 = vpop.permute.xlu2 %888 }
 0x135   :  { %749 = vmatmul.bf16.gmra.mxu0 %v2139_v63  ;;  %759 = vmatmul.bf16.gmra.mxu1 %v2141_v38  ;;  %v883_v23 = vpop.permute.xlu1 %882 }
 0x136   :  { %769 = vmatmul.bf16.gmra.mxu2 %v2143_v39  ;;  %779 = vmatmul.bf16.gmra.mxu3 %v2145_v43  ;;  %vm926_vm6 = vcmp.eq.s32.totalorder %v883_v23, %v3344_v30 }
 0x137   :  { %v895_v61 = vpop.permute.xlu2 %894  ;;  %v880_v53 = vpop.permute.xlu0 %879  ;;  %vm3417_vm10 = vmand %vm3395_vm4, %vm926_vm6 }
 0x138   :  { %v4216_v25 = vsel %vm3417_vm10, 4294967295, %v4215_v25  ;;  %vm930_vm12 = vcmp.eq.s32.totalorder %v895_v61, %v3344_v30  ;;  %vm925_vm14 = vcmp.eq.s32.totalorder %v880_v53, %v3344_v30  ;;  %v2123_v34 = vsel %vm3417_vm10, 1.0, %v4151_v0 }
 0x139   :  { %vm3429_vm2 = vmand %vm3402_vm5, %vm930_vm12  ;;  %1473 = vadd.xlane.f32.xlu1 %v2123_v34  ;;  %vm928_vm12 = vcmp.eq.s32.totalorder %v889_v26, %v3344_v30  ;;  %vm834_vm5 = vcmp.ne.s32.totalorder %v795_v20, %v3348_v10  ;;  %v800_v34 = vadd.s32 104, %v3346_v14 }
 0x13a   :  { %v4218_v54 = vsel %vm3429_vm2, 4294967295, %v4217_v54  ;;  %v2127_v50 = vsel %vm3429_vm2, 1.0, %v4151_v0  ;;  %vm3439_vm6 = vmand %vm3410_vm8, %vm925_vm14 }
 0x13b   :  { %v4220_v22 = vsel %vm3439_vm6, 4294967295, %v4219_v22  ;;  %1481 = vadd.xlane.f32.xlu0 %v2127_v50  ;;  %v2122_v19 = vsel %vm3439_vm6, 1.0, %v4151_v0  ;;  %vm3456_vm14 = vmand %vm4127_vm7, %vm831_vm3  ;;  %vm838_vm7 = vcmp.ne.s32.totalorder %v799_v15, %v3348_v10 }
 0x13c   :  { %1471 = vadd.xlane.f32.xlu2 %v2122_v19  ;;  %v4224_v13 = vsel %vm3456_vm14, 4294967295, %v4223_v13  ;;  %vm3470_vm2 = vmand %vm3450_vm15, %vm928_vm12 }
 0x13d   :  { %v892_v21 = vpop.permute.xlu1 %891  ;;  %v2125_v51 = vsel %vm3470_vm2, 1.0, %v4151_v0 }
 0x13e   :  { %vm929_vm1 = vcmp.eq.s32.totalorder %v892_v21, %v3344_v30 }
 0x13f   :  { %v904_v6 = vpop.permute.xlu2 %903  ;;  %vm3477_vm3 = vmand %vm3456_vm14, %vm929_vm1  ;;  %vm833_vm1 = vcmp.ne.s32.totalorder %v794_v41, %v3348_v10  ;;  %v4259_v41 = vmov 0 }
 0x140   :  { %vm933_vm0 = vcmp.eq.s32.totalorder %v904_v6, %v3344_v30  ;;  %v2126_v18 = vsel %vm3477_vm3, 1.0, %v4151_v0  ;;  %v901_v44 = vpop.permute.xlu0 %900 }
 0x141   :  { %vm3488_vm12 = vmand %vm3462_vm13, %vm933_vm0  ;;  %1479 = vadd.xlane.f32.xlu1 %v2126_v18  ;;  %vm4233_vm0 = vcmp.lt.s32.totalorder %v3348_v10, 8  ;;  %v1424_v18 = vld [vmem:[#allocation6 + $0x18] sm:$0xff] }
 0x142   :  { %v4232_v52 = vsel %vm3488_vm12, 4294967295, %v4231_v52  ;;  %v2130_v31 = vsel %vm3488_vm12, 1.0, %v4151_v0  ;;  %vm3503_vm6 = vmand %vm4233_vm0, %vm833_vm1 }
 0x143   :  { %1487 = vadd.xlane.f32.xlu0 %v2130_v31  ;;  %v4235_v28 = vsel %vm3503_vm6, 4294967295, %v4234_v28  ;;  %vm4236_vm10 = vmmov %vm4233_vm0 }
 0x144   :  { %1477 = vadd.xlane.f32.xlu2 %v2125_v51  ;;  %vm3509_vm13 = vmand %vm4236_vm10, %vm838_vm7  ;;  %vm932_vm10 = vcmp.eq.s32.totalorder %v901_v44, %v3344_v30  ;;  %v4263_v44 = vmov 0 }
 0x145   :  { %v898_v7 = vpop.permute.xlu1 %897  ;;  %vm4239_vm4 = vmmov %vm4233_vm0  ;;  %vm837_vm0 = vcmp.ne.s32.totalorder %v798_v56, %v3348_v10 }
 0x146   :  { %vm931_vm12 = vcmp.eq.s32.totalorder %v898_v7, %v3344_v30  ;;  %vm3516_vm14 = vmand %vm4239_vm4, %vm834_vm5 }
 0x147   :  { %v913_v48 = vpop.permute.xlu2 %912  ;;  %vm3522_vm1 = vmand %vm3503_vm6, %vm931_vm12  ;;  %vm836_vm12 = vcmp.ne.s32.totalorder %v797_v55, %v3348_v10 }
 0x148   :  { %v4243_v12 = vsel %vm3522_vm1, 4294967295, %v4242_v12  ;;  %vm936_vm7 = vcmp.eq.s32.totalorder %v913_v48, %v3344_v30  ;;  %v2128_v2 = vsel %vm3522_vm1, 1.0, %v4151_v0  ;;  %vm3544_vm5 = vmand %vm3516_vm14, %vm932_vm10 }
 0x149   :  { %vm3532_vm4 = vmand %vm3509_vm13, %vm936_vm7  ;;  %v2129_v47 = vsel %vm3544_vm5, 1.0, %v4151_v0  ;;  %vm4248_vm7 = vcmp.lt.s32.totalorder %v3348_v10, 8 }
 0x14a   :  { %v2133_v35 = vsel %vm3532_vm4, 1.0, %v4151_v0  ;;  %1485 = vadd.xlane.f32.xlu1 %v2129_v47  ;;  %vm3555_vm1 = vmand %vm4248_vm7, %vm836_vm12  ;;  %v1427_v47 = vld [vmem:[#allocation6 + $0x30] sm:$0xff] }
 0x14b   :  { %1493 = vadd.xlane.f32.xlu0 %v2133_v35  ;;  %v4250_v1 = vsel %vm3555_vm1, 4294967295, %v4249_v1  ;;  %vm4251_vm10 = vmmov %vm4248_vm7 }
 0x14c   :  { %1483 = vadd.xlane.f32.xlu2 %v2128_v2  ;;  %vm3563_vm6 = vmand %vm4251_vm10, %vm837_vm0  ;;  %v1422_v2 = vld [vmem:[#allocation6 + $0x8] sm:$0xff] }
 0x14d   :  { %v907_v11 = vpop.permute.xlu1 %906 }
 0x14e   :  { %vm934_vm8 = vcmp.eq.s32.totalorder %v907_v11, %v3344_v30 }
 0x14f   :  { %v3559_v46 = vpop.permute.xlu2 %921  ;;  %vm3573_vm7 = vmand %vm3555_vm1, %vm934_vm8  ;;  %vm839_vm8 = vcmp.ne.s32.totalorder %v800_v34, %v3348_v10  ;;  %v1423_v34 = vld [vmem:[#allocation6 + $0x10] sm:$0xff] }
 0x150   :  { %v2131_v8 = vsel %vm3573_vm7, 1.0, %v4151_v0 }
 0x154   :  { %v910_v63 = vpop.permute.xlu0 %909  ;;  %1489 = vadd.xlane.f32.xlu2 %v2131_v8 }
 0x155   :  { %vm935_vm12 = vcmp.eq.s32.totalorder %v910_v63, %v3344_v30  ;;  %v916_v15 = vpop.permute.xlu1 %915 }
 0x156   :  { %vm3582_vm0 = vmand %vm3563_vm6, %vm935_vm12 }
 0x157   :  { %v2132_v43 = vsel %vm3582_vm0, 1.0, %v4151_v0 }
 0x158   :  { %1491 = vadd.xlane.f32.xlu1 %v2132_v43 }
 0x15c   :  { %v3618_v19 = vpop.permute.xlu0 %918 }
 0x196   :  { %v1470_v20 = vpop.xlane.xlu2 %1469 }
 0x197   :  { %v1501_v7 = vadd.f32 %v1470_v20, %v1421_v49 }
 0x19e   :  { %v1476_v51 = vpop.xlane.xlu0 %1475 }
 0x19f   :  { %v1504_v48 = vadd.f32 %v1476_v51, %v1424_v18 }
 0x1a2   :  { %v3589_v26 = vpop.f32.mrf.mxu0  ;;  %v3591_v3 = vpop.f32.mrf.mxu1 }
 0x1a3   :  { %v1345_v27 = vsel %vm3470_vm2, %v3591_v3, 0.0  ;;  %v976_v57 = vsel %vm3450_vm15, %v3591_v3, -1e+30  ;;  %v972_v36 = vsel %vm3355_vm9, %v3589_v26, -1e+30  ;;  %v1341_v50 = vsel %vm3363_vm11, %v3589_v26, 0.0  ;;  %vm4258_vm2 = vmmov %vm4251_vm10 }
 0x1a4   :  { %1365 = vadd.xlane.f32.xlu0 %v1345_v27  ;;  %996 = vmax.xlane.f32.xlu2 %v976_v57  ;;  %vm3625_vm10 = vmand %vm4258_vm2, %vm839_vm8  ;;  %vm937_vm11 = vcmp.eq.s32.totalorder %v916_v15, %v3344_v30  ;;  %vm4265_vm8 = vnez %v4214_v37  ;;  %v1430_v15 = vld [vmem:[#allocation6 + $0x48] sm:$0xff] }
 0x1a5   :  { %988 = vmax.xlane.f32.xlu1 %v972_v36  ;;  %v4260_v41 = vsel %vm3625_vm10, 4294967295, %v4259_v41  ;;  %vm3645_vm12 = vmand %vm3625_vm10, %vm937_vm11 }
 0x1a6   :  { %v4264_v44 = vsel %vm3645_vm12, 4294967295, %v4263_v44  ;;  %vm4266_vm2 = vmmov %vm3544_vm5  ;;  %vm4269_vm5 = vnez %v4224_v13 }
 0x1a9   :  { %v3602_v23 = vpop.f32.mrf.mxu2  ;;  %v3604_v32 = vpop.f32.mrf.mxu3 }
 0x1aa   :  { %v3606_v17 = vpop.f32.mrf.mxu1  ;;  %v980_v61 = vsel %vm3516_vm14, %v3602_v23, -1e+30  ;;  %v1353_v5 = vsel %vm3532_vm4, %v3604_v32, 0.0  ;;  %v984_v6 = vsel %vm3509_vm13, %v3604_v32, -1e+30  ;;  %v3638_v31 = vpop.f32.mrf.mxu0  ;;  %v1349_v9 = vsel %vm4266_vm2, %v3602_v23, 0.0 }
 0x1ab   :  { %v1346_v53 = vsel %vm3477_vm3, %v3606_v17, 0.0  ;;  %vm4261_vm3 = vcmask 7168   ;;  %v973_v55 = vsel %vm4265_vm8, %v3638_v31, -1e+30  ;;  %v977_v36 = vsel %vm4269_vm5, %v3606_v17, -1e+30 }
 0x1ac   :  { %1004 = vmax.xlane.f32.xlu0 %v980_v61  ;;  %1367 = vadd.xlane.f32.xlu2 %v1346_v53  ;;  %1517 = vst.msk [vmem:[#allocation6] sm:$0xff] %vm4261_vm3, %v1501_v7  ;;  %vm4262_vm4 = vmmov %vm4261_vm3 }
 0x1ad   :  { %1357 = vadd.xlane.f32.xlu1 %v1341_v50  ;;  %1520 = vst.msk [vmem:[#allocation6 + $0x18] sm:$0xff] %vm4262_vm4, %v1504_v48  ;;  %vm4267_vm4 = vmmov %vm4261_vm3  ;;  %v1474_v50 = vpop.xlane.xlu1 %1473 }
 0x1ae   :  { %v1482_v11 = vpop.xlane.xlu0 %1481  ;;  %vm4268_vm2 = vmmov %vm4261_vm3 }
 0x1af   :  { %v1472_v35 = vpop.xlane.xlu2 %1471  ;;  %v1507_v8 = vadd.f32 %v1482_v11, %v1427_v47  ;;  %v1433_v47 = vld [vmem:[#allocation6 + $0x60] sm:$0xff] }
 0x1b0   :  { %v1502_v63 = vadd.f32 %v1472_v35, %v1422_v2  ;;  %v1428_v2 = vld [vmem:[#allocation6 + $0x38] sm:$0xff] }
 0x1b1   :  { %v3621_v21 = vpop.f32.mrf.mxu3  ;;  %v3664_v57 = vpop.f32.mrf.mxu2  ;;  %1523 = vst.msk [vmem:[#allocation6 + $0x30] sm:$0xff] %vm4267_vm4, %v1507_v8  ;;  %vm4272_vm4 = vmmov %vm4268_vm2 }
 0x1b2   :  { %v985_v33 = vsel %vm3625_vm10, %v3621_v21, -1e+30  ;;  %v1354_v56 = vsel %vm3645_vm12, %v3621_v21, 0.0  ;;  %v3660_v27 = vpop.f32.mrf.mxu0  ;;  %1518 = vst.msk [vmem:[#allocation6 + $0x8] sm:$0xff] %vm4261_vm3, %v1502_v63  ;;  %vm4270_vm3 = vnez %v4210_v45  ;;  %v3684_v51 = vpop.f32.mrf.mxu1  ;;  %vm4273_vm12 = vmmov %vm4268_vm2  ;;  %vm4276_vm10 = vnez %v4212_v59 }
 0x1b3   :  { %v3658_v43 = vld [vmem:[#allocation6] sm:$0xff]  ;;  %v974_v61 = vsel %vm4270_vm3, %v3660_v27, -1e+30  ;;  %vm4274_vm3 = vnez %v4216_v25 }
 0x1b4   :  { %1381 = vadd.xlane.f32.xlu0 %v1353_v5  ;;  %1014 = vmax.xlane.f32.xlu2 %v985_v33  ;;  %vm4145_vm11 = vcmp.gt.f32.partialorder %v3658_v43, 0.0  ;;  %v1425_v5 = vld [vmem:[#allocation6 + $0x20] sm:$0xff]  ;;  %v1343_v7 = vsel %vm4274_vm3, %v3660_v27, 0.0  ;;  %vm4279_vm3 = vmmov %vm4268_vm2 }
 0x1b5   :  { %1012 = vmax.xlane.f32.xlu1 %v984_v6  ;;  %v2137_v29 = vsel %vm4145_vm11, 1.0, %v4151_v0  ;;  %vm4271_vm11 = vnez %v4226_v58  ;;  %v1503_v6 = vadd.f32 %v1474_v50, %v1423_v34  ;;  %v1431_v34 = vld [vmem:[#allocation6 + $0x50] sm:$0xff] }
 0x1b6   :  { %2064 = vst.msk [vmem:[%s4121_s5] sm:$0xff] %vm4268_vm2, %v2137_v29  ;;  %v981_v53 = vsel %vm4271_vm11, %v3664_v57, -1e+30  ;;  %v1488_v20 = vpop.xlane.xlu0 %1487  ;;  %vm4275_vm11 = vnez %v4220_v22  ;;  %v801_v22 = vadd.s32 112, %v3346_v14 }
 0x1b7   :  { %v1478_v33 = vpop.xlane.xlu2 %1477  ;;  %v1510_v18 = vadd.f32 %v1488_v20, %v1430_v15  ;;  %1519 = vst.msk [vmem:[#allocation6 + $0x10] sm:$0xff] %vm4272_vm4, %v1503_v6  ;;  %v1342_v48 = vsel %vm4275_vm11, %v3638_v31, 0.0  ;;  %vm4278_vm11 = vmmov %vm4268_vm2  ;;  %vm4280_vm4 = vnez %v4232_v52  ;;  %v4287_v20 = vmov 0 }
 0x1b8   :  { %v1505_v49 = vadd.f32 %v1478_v33, %v1425_v5  ;;  %v1429_v5 = vld [vmem:[#allocation6 + $0x40] sm:$0xff] }
 0x1b9   :  { %1526 = vst.msk [vmem:[#allocation6 + $0x48] sm:$0xff] %vm4273_vm12, %v1510_v18  ;;  %v3697_v29 = vpop.f32.mrf.mxu2  ;;  %vm4277_vm12 = vmmov %vm4268_vm2  ;;  %v3715_v52 = vpop.f32.mrf.mxu3 }
 0x1ba   :  { %1521 = vst.msk [vmem:[#allocation6 + $0x20] sm:$0xff] %vm4268_vm2, %v1505_v49  ;;  %vm4281_vm2 = vnez %v4218_v54  ;;  %v4283_v49 = vmov 0  ;;  %v1351_v54 = vsel %vm3573_vm7, %v3697_v29, 0.0 }
 0x1bc   :  { %990 = vmax.xlane.f32.xlu0 %v973_v55  ;;  %1383 = vadd.xlane.f32.xlu2 %v1354_v56  ;;  %v978_v55 = vsel %vm4276_vm10, %v3684_v51, -1e+30  ;;  %v1426_v56 = vld [vmem:[#allocation6 + $0x28] sm:$0xff] }
 0x1bd   :  { %1373 = vadd.xlane.f32.xlu1 %v1349_v9  ;;  %v1480_v9 = vpop.xlane.xlu1 %1479 }
 0x1be   :  { %v1506_v11 = vadd.f32 %v1480_v9, %v1426_v56  ;;  %v1494_v25 = vpop.xlane.xlu0 %1493  ;;  %v3742_v56 = vpop.f32.mrf.mxu1 }
 0x1bf   :  { %v1484_v35 = vpop.xlane.xlu2 %1483  ;;  %v1513_v8 = vadd.f32 %v1494_v25, %v1433_v47  ;;  %v3745_v9 = vpop.f32.mrf.mxu0 }
 0x1c0   :  { %v1508_v63 = vadd.f32 %v1484_v35, %v1428_v2  ;;  %1522 = vst.msk [vmem:[#allocation6 + $0x28] sm:$0xff] %vm4277_vm12, %v1506_v11  ;;  %vm840_vm12 = vcmp.ne.s32.totalorder %v801_v22, %v3348_v10 }
 0x1c1   :  { %1529 = vst.msk [vmem:[#allocation6 + $0x60] sm:$0xff] %vm4279_vm3, %v1513_v8  ;;  %vm4282_vm3 = vcmp.lt.s32.totalorder %v3348_v10, 8  ;;  %v3763_v11 = vpop.f32.mrf.mxu2  ;;  %v3786_v8 = vpop.f32.mrf.mxu3 }
 0x1c2   :  { %1524 = vst.msk [vmem:[#allocation6 + $0x38] sm:$0xff] %vm4278_vm11, %v1508_v63  ;;  %vm938_vm11 = vcmp.eq.s32.totalorder %v3618_v19, %v3344_v30  ;;  %v983_v63 = vsel %vm3563_vm6, %v3763_v11, -1e+30 }
 0x1c4   :  { %998 = vmax.xlane.f32.xlu0 %v977_v36  ;;  %992 = vmax.xlane.f32.xlu2 %v974_v61  ;;  %v982_v36 = vsel %vm3555_vm1, %v3697_v29, -1e+30  ;;  %v1350_v61 = vsel %vm4280_vm4, %v3664_v57, 0.0  ;;  %vm3719_vm4 = vmand %vm4282_vm3, %vm840_vm12 }
 0x1c5   :  { %1006 = vmax.xlane.f32.xlu1 %v981_v53  ;;  %v1347_v53 = vsel %vm4281_vm2, %v3684_v51, 0.0  ;;  %v1486_v33 = vpop.xlane.xlu1 %1485  ;;  %v4284_v49 = vsel %vm3719_vm4, 4294967295, %v4283_v49  ;;  %vm4285_vm2 = vcmask 7168   ;;  %v986_v19 = vsel %vm3719_vm4, %v3715_v52, -1e+30  ;;  %vm3733_vm1 = vmand %vm3719_vm4, %vm938_vm11 }
 0x1c6   :  { %v1509_v6 = vadd.f32 %v1486_v33, %v1429_v5  ;;  %vm4286_vm10 = vmmov %vm4285_vm2  ;;  %v4288_v20 = vsel %vm3733_vm1, 4294967295, %v4287_v20  ;;  %v1355_v18 = vsel %vm3733_vm1, %v3715_v52, 0.0  ;;  %vm4295_vm1 = vnez %v4243_v12 }
 0x1c7   :  { %v1490_v50 = vpop.xlane.xlu2 %1489  ;;  %vm4289_vm7 = vmmov %vm4285_vm2  ;;  %v1348_v35 = vsel %vm4295_vm1, %v3742_v56, 0.0  ;;  %v802_v12 = vadd.s32 120, %v3346_v14 }
 0x1c8   :  { %v1511_v15 = vadd.f32 %v1490_v50, %v1431_v34  ;;  %1525 = vst.msk [vmem:[#allocation6 + $0x40] sm:$0xff] %vm4286_vm10, %v1509_v6  ;;  %vm4290_vm10 = vmmov %vm4285_vm2 }
 0x1c9   :  { %vm4291_vm12 = vmmov %vm4285_vm2 }
 0x1ca   :  { %1527 = vst.msk [vmem:[#allocation6 + $0x50] sm:$0xff] %vm4285_vm2, %v1511_v15  ;;  %vm4292_vm11 = vmmov %vm4285_vm2 }
 0x1cb   :  { %vm4293_vm3 = vmmov %vm4285_vm2  ;;  %vm4294_vm2 = vnez %v4235_v28 }
 0x1cc   :  { %1361 = vadd.xlane.f32.xlu2 %v1343_v7  ;;  %1359 = vadd.xlane.f32.xlu0 %v1342_v48  ;;  %v1432_v7 = vld [vmem:[#allocation6 + $0x58] sm:$0xff]  ;;  %v979_v2 = vsel %vm4294_vm2, %v3742_v56, -1e+30  ;;  %vm4300_vm4 = vmmov %vm4293_vm3 }
 0x1cd   :  { %1000 = vmax.xlane.f32.xlu1 %v978_v55  ;;  %v1492_v38 = vpop.xlane.xlu1 %1491  ;;  %v2397_v55 = vmov -1e+30   ;;  %vm4301_vm1 = vmmov %vm4293_vm3 }
 0x1ce   :  { %v1512_v48 = vadd.f32 %v1492_v38, %v1432_v7  ;;  %348 = vst.msk [vmem:[#allocation3 + $0x20] sm:$0xff] %vm4289_vm7, %v2397_v55  ;;  %vm4296_vm7 = vmmov %vm4293_vm3 }
 0x1cf   :  { %344 = vst.msk [vmem:[#allocation3] sm:$0xff] %vm4290_vm10, %v2397_v55  ;;  %vm4297_vm10 = vnez %v4206_v42  ;;  %vm4303_vm2 = vmmov %vm4301_vm1 }
 0x1d0   :  { %1528 = vst.msk [vmem:[#allocation6 + $0x58] sm:$0xff] %vm4291_vm12, %v1512_v48  ;;  %v975_v47 = vsel %vm4297_vm10, %v3745_v9, -1e+30  ;;  %vm4298_vm12 = vmmov %vm4293_vm3 }
 0x1d1   :  { %345 = vst.msk [vmem:[#allocation3 + $0x8] sm:$0xff] %vm4292_vm11, %v2397_v55  ;;  %vm4299_vm11 = vmmov %vm4293_vm3 }
 0x1d2   :  { %346 = vst.msk [vmem:[#allocation3 + $0x10] sm:$0xff] %vm4293_vm3, %v2397_v55 }
 0x1d3   :  { %347 = vst.msk [vmem:[#allocation3 + $0x18] sm:$0xff] %vm4296_vm7, %v2397_v55  ;;  %vm4302_vm7 = vmmov %vm4301_vm1 }
 0x1d4   :  { %1008 = vmax.xlane.f32.xlu2 %v982_v36  ;;  %1375 = vadd.xlane.f32.xlu0 %v1350_v61  ;;  %349 = vst.msk [vmem:[#allocation3 + $0x28] sm:$0xff] %vm4298_vm12, %v2397_v55  ;;  %vm4304_vm12 = vmmov %vm4301_vm1  ;;  %v1329_v36 = vld [vmem:[#allocation5 + $0x20] sm:$0xff] }
 0x1d5   :  { %1369 = vadd.xlane.f32.xlu1 %v1347_v53  ;;  %350 = vst.msk [vmem:[#allocation3 + $0x30] sm:$0xff] %vm4299_vm11, %v2397_v55  ;;  %vm841_vm11 = vcmp.ne.s32.totalorder %v802_v12, %v3348_v10 }
 0x1d6   :  { %351 = vst.msk [vmem:[#allocation3 + $0x38] sm:$0xff] %vm4293_vm3, %v2397_v55  ;;  %vm4306_vm3 = vmmov %vm4301_vm1  ;;  %v3808_v61 = vld [vmem:[#allocation3] sm:$0xff] }
 0x1d7   :  { %352 = vst.msk [vmem:[#allocation3 + $0x40] sm:$0xff] %vm4300_vm4, %v2397_v55  ;;  %vm4305_vm4 = vnez %v4208_v16 }
 0x1d8   :  { %353 = vst.msk [vmem:[#allocation3 + $0x48] sm:$0xff] %vm4301_vm1, %v2397_v55  ;;  %v1344_v25 = vsel %vm4305_vm4, %v3745_v9, 0.0 }
 0x1d9   :  { %354 = vst.msk [vmem:[#allocation3 + $0x50] sm:$0xff] %vm4302_vm7, %v2397_v55  ;;  %vm4307_vm7 = vmmov %vm4301_vm1 }
 0x1da   :  { %355 = vst.msk [vmem:[#allocation3 + $0x58] sm:$0xff] %vm4303_vm2, %v2397_v55  ;;  %vm4308_vm2 = vcmp.lt.s32.totalorder %v3348_v10, 8 }
 0x1db   :  { %356 = vst.msk [vmem:[#allocation3 + $0x60] sm:$0xff] %vm4304_vm12, %v2397_v55  ;;  %vm3782_vm10 = vmand %vm4308_vm2, %vm841_vm11  ;;  %vm4311_vm12 = vcmp.eq.s32.totalorder %v3559_v46, %v3344_v30  ;;  %v1352_v30 = vsel %vm3582_vm0, %v3763_v11, 0.0  ;;  %v3806_v46 = vld [vmem:[#allocation3 + $0x20] sm:$0xff] }
 0x1dc   :  { %1377 = vadd.xlane.f32.xlu2 %v1351_v54  ;;  %1016 = vmax.xlane.f32.xlu0 %v986_v19  ;;  %357 = vst.msk [vmem:[#allocation3 + $0x68] sm:$0xff] %vm4306_vm3, %v2397_v55  ;;  %vm3793_vm4 = vmand %vm3782_vm10, %vm4311_vm12  ;;  %v987_v10 = vsel %vm3782_vm10, %v3786_v8, -1e+30  ;;  %v1330_v54 = vld [vmem:[#allocation5 + $0x28] sm:$0xff] }
 0x1dd   :  { %1385 = vadd.xlane.f32.xlu1 %v1355_v18  ;;  %358 = vst.msk [vmem:[#allocation3 + $0x70] sm:$0xff] %vm4301_vm1, %v2397_v55  ;;  %v1356_v22 = vsel %vm3793_vm4, %v3786_v8, 0.0  ;;  %vm4314_vm0 = vmmov %vm4301_vm1  ;;  %v1325_v18 = vld [vmem:[#allocation5] sm:$0xff] }
 0x1de   :  { %359 = vst.msk [vmem:[#allocation3 + $0x78] sm:$0xff] %vm4307_vm7, %v2397_v55  ;;  %vm4315_vm11 = vmmov %vm4314_vm0  ;;  %v3826_v19 = vld [vmem:[#allocation3 + $0x40] sm:$0xff] }
 0x1df   :  { %vm4316_vm3 = vmmov %vm4314_vm0 }
 0x1e0   :  { %vm4317_vm1 = vmmov %vm4314_vm0 }
 0x1e1   :  { %vm4318_vm7 = vmmov %vm4314_vm0 }
 0x1e2   :  { %vm4319_vm2 = vmmov %vm4314_vm0 }
 0x1e3   :  { %v3839_v12 = vld [vmem:[#allocation3 + $0x68] sm:$0xff]  ;;  %vm4320_vm12 = vmmov %vm4314_vm0 }
 0x1e4   :  { %1002 = vmax.xlane.f32.xlu2 %v979_v2  ;;  %1371 = vadd.xlane.f32.xlu0 %v1348_v35 }
 0x1e5   :  { %994 = vmax.xlane.f32.xlu1 %v975_v47 }
 0x1ec   :  { %1010 = vmax.xlane.f32.xlu0 %v983_v63  ;;  %v1337_v63 = vld [vmem:[#allocation5 + $0x60] sm:$0xff] }
 0x1ed   :  { %1363 = vadd.xlane.f32.xlu1 %v1344_v25  ;;  %v3841_v25 = vld [vmem:[#allocation3 + $0x60] sm:$0xff] }
 0x1f4   :  { %1387 = vadd.xlane.f32.xlu0 %v1356_v22 }
 0x1f5   :  { %1018 = vmax.xlane.f32.xlu1 %v987_v10 }
 0x1fd   :  { %1379 = vadd.xlane.f32.xlu1 %v1352_v30 }
 0x217   :  { %v997_v53 = vpop.xlane.xlu2 %996  ;;  %v1366_v34 = vpop.xlane.xlu0 %1365 }
 0x218   :  { %v3811_v50 = vmax.f32 %v3806_v46, %v997_v53  ;;  %v989_v5 = vpop.xlane.xlu1 %988  ;;  %v1393_v33 = vadd.f32 %v1366_v34, %v1329_v36 }
 0x219   :  { %v3814_v15 = vmax.f32 %v3808_v61, %v989_v5  ;;  %v3901_v5 = vld [vmem:[#allocation3 + $0x30] sm:$0xff] }
 0x21a   :  { %1537 = vst.msk [vmem:[#allocation3 + $0x20] sm:$0xff] %vm4314_vm0, %v3811_v50 }
 0x21b   :  { %1533 = vst.msk [vmem:[#allocation3] sm:$0xff] %vm4315_vm11, %v3814_v15  ;;  %1086 = vperm.xlu2 %2223, %v3814_v15   ;;  %vm4321_vm11 = vmmov %vm4314_vm0 }
 0x21c   :  { %1409 = vst.msk [vmem:[#allocation5 + $0x20] sm:$0xff] %vm4316_vm3, %v1393_v33  ;;  %vm4322_vm3 = vmmov %vm4314_vm0 }
 0x21d   :  { %4331 = vst [vmem:[#allocation14_spill] sm:$0xff] %v3901_v5 }
 0x21f   :  { %v1368_v7 = vpop.xlane.xlu2 %1367  ;;  %v1005_v38 = vpop.xlane.xlu0 %1004 }
 0x220   :  { %v1394_v48 = vadd.f32 %v1368_v7, %v1330_v54  ;;  %v1358_v55 = vpop.xlane.xlu1 %1357  ;;  %v3829_v2 = vmax.f32 %v3826_v19, %v1005_v38  ;;  %v1338_v54 = vld [vmem:[#allocation5 + $0x68] sm:$0xff]  ;;  %v1333_v7 = vld [vmem:[#allocation5 + $0x40] sm:$0xff] }
 0x221   :  { %v1389_v35 = vadd.f32 %v1358_v55, %v1325_v18  ;;  %v3860_v18 = vld [vmem:[#allocation3 + $0x8] sm:$0xff] }
 0x222   :  { %1410 = vst.msk [vmem:[#allocation5 + $0x28] sm:$0xff] %vm4317_vm1, %v1394_v48  ;;  %1126 = vperm.xlu1 %2225, %v3829_v2   ;;  %vm4323_vm1 = vmmov %vm4314_vm0 }
 0x223   :  { %1405 = vst.msk [vmem:[#allocation5] sm:$0xff] %vm4318_vm7, %v1389_v35  ;;  %1106 = vperm.xlu2 %2223, %v3811_v50   ;;  %vm4324_vm7 = vmmov %vm4314_vm0 }
 0x224   :  { %1541 = vst.msk [vmem:[#allocation3 + $0x40] sm:$0xff] %vm4319_vm2, %v3829_v2  ;;  %vm4329_vm2 = vmmov %vm4314_vm0 }
 0x227   :  { %v1015_v22 = vpop.xlane.xlu2 %1014  ;;  %v1382_v10 = vpop.xlane.xlu0 %1381 }
 0x228   :  { %v3844_v30 = vmax.f32 %v3839_v12, %v1015_v22  ;;  %v1013_v36 = vpop.xlane.xlu1 %1012  ;;  %v1401_v53 = vadd.f32 %v1382_v10, %v1337_v63 }
 0x229   :  { %v3847_v34 = vmax.f32 %v3841_v25, %v1013_v36  ;;  %v3872_v36 = vld [vmem:[#allocation3 + $0x10] sm:$0xff] }
 0x22a   :  { %1546 = vst.msk [vmem:[#allocation3 + $0x68] sm:$0xff] %vm4320_vm12, %v3844_v30  ;;  %vm4330_vm12 = vmmov %vm4314_vm0 }
 0x22b   :  { %1545 = vst.msk [vmem:[#allocation3 + $0x60] sm:$0xff] %vm4314_vm0, %v3847_v34  ;;  %1151 = vperm.xlu2 %2223, %v3844_v30   ;;  %1146 = vperm.xlu0 %2224, %v3847_v34  }
 0x22c   :  { %1417 = vst.msk [vmem:[#allocation5 + $0x60] sm:$0xff] %vm4321_vm11, %v1401_v53  ;;  %v3874_v53 = vld [vmem:[#allocation3 + $0x28] sm:$0xff]  ;;  %vm4333_vm11 = vmmov %vm4314_vm0 }
 0x22d   :  { %4325 = vst [vmem:[#allocation10_spill] sm:$0xff] %v3872_v36 }
 0x22f   :  { %v1384_v38 = vpop.xlane.xlu2 %1383  ;;  %v991_v48 = vpop.xlane.xlu0 %990 }
 0x230   :  { %v1402_v55 = vadd.f32 %v1384_v38, %v1338_v54  ;;  %v1374_v35 = vpop.xlane.xlu1 %1373  ;;  %v3863_v63 = vmax.f32 %v3860_v18, %v991_v48  ;;  %v3876_v54 = vld [vmem:[#allocation3 + $0x48] sm:$0xff] }
 0x231   :  { %v1397_v22 = vadd.f32 %v1374_v35, %v1333_v7  ;;  %4326 = vst [vmem:[#allocation11_spill] sm:$0xff] %v3876_v54 }
 0x232   :  { %1418 = vst.msk [vmem:[#allocation5 + $0x68] sm:$0xff] %vm4322_vm3, %v1402_v55  ;;  %vm4334_vm3 = vmmov %vm4314_vm0 }
 0x233   :  { %1413 = vst.msk [vmem:[#allocation5 + $0x40] sm:$0xff] %vm4323_vm1, %v1397_v22  ;;  %1091 = vperm.xlu0 %2224, %v3863_v63   ;;  %vm4335_vm1 = vmmov %vm4314_vm0 }
 0x234   :  { %1534 = vst.msk [vmem:[#allocation3 + $0x8] sm:$0xff] %vm4324_vm7, %v3863_v63  ;;  %vm4336_vm7 = vmmov %vm4314_vm0 }
 0x237   :  { %v993_v38 = vpop.xlane.xlu2 %992  ;;  %v999_v7 = vpop.xlane.xlu0 %998 }
 0x238   :  { %v3879_v48 = vmax.f32 %v3872_v36, %v993_v38  ;;  %v1007_v55 = vpop.xlane.xlu1 %1006  ;;  %v3882_v35 = vmax.f32 %v3874_v53, %v999_v7  ;;  %v1327_v7 = vld [vmem:[#allocation5 + $0x10] sm:$0xff] }
 0x239   :  { %v3885_v22 = vmax.f32 %v3876_v54, %v1007_v55  ;;  %v1326_v55 = vld [vmem:[#allocation5 + $0x8] sm:$0xff] }
 0x23a   :  { %4327 = vst [vmem:[#allocation12_spill] sm:$0xff] %v3879_v48  ;;  %1111 = vperm.xlu1 %2225, %v3882_v35  }
 0x23b   :  { %4328 = vst [vmem:[#allocation13_spill] sm:$0xff] %v3885_v22  ;;  %1131 = vperm.xlu0 %2224, %v3885_v22  }
 0x23c   :  { %1535 = vst.msk [vmem:[#allocation3 + $0x10] sm:$0xff] %vm4329_vm2, %v3879_v48  ;;  %vm4337_vm2 = vmmov %vm4314_vm0 }
 0x23d   :  { %1542 = vst.msk [vmem:[#allocation3 + $0x48] sm:$0xff] %vm4330_vm12, %v3885_v22  ;;  %vm4338_vm12 = vmmov %vm4314_vm0 }
 0x23e   :  { %1538 = vst.msk [vmem:[#allocation3 + $0x28] sm:$0xff] %vm4314_vm0, %v3882_v35 }
 0x23f   :  { %v1362_v33 = vpop.xlane.xlu2 %1361  ;;  %v1360_v47 = vpop.xlane.xlu0 %1359 }
 0x240   :  { %v1391_v10 = vadd.f32 %v1362_v33, %v1327_v7  ;;  %v1001_v39 = vpop.xlane.xlu1 %1000  ;;  %v1390_v6 = vadd.f32 %v1360_v47, %v1326_v55  ;;  %v3914_v33 = vld [vmem:[#allocation3 + $0x50] sm:$0xff]  ;;  %v1334_v47 = vld [vmem:[#allocation5 + $0x48] sm:$0xff] }
 0x241   :  { %v3904_v0 = vmax.f32 %v3901_v5, %v1001_v39  ;;  %v1331_v7 = vld [vmem:[#allocation5 + $0x30] sm:$0xff] }
 0x242   :  { %1407 = vst.msk [vmem:[#allocation5 + $0x10] sm:$0xff] %vm4333_vm11, %v1391_v10  ;;  %1096 = vperm.xlu1 %2225, %v3879_v48   ;;  %vm4341_vm11 = vmmov %vm4314_vm0 }
 0x243   :  { %4332 = vst [vmem:[#allocation15_spill] sm:$0xff] %v3904_v0  ;;  %1116 = vperm.xlu0 %2224, %v3904_v0  }
 0x244   :  { %1539 = vst.msk [vmem:[#allocation3 + $0x30] sm:$0xff] %vm4334_vm3, %v3904_v0  ;;  %v3926_v0 = vld [vmem:[#allocation3 + $0x70] sm:$0xff]  ;;  %vm4342_vm3 = vmmov %vm4314_vm0 }
 0x245   :  { %1406 = vst.msk [vmem:[#allocation5 + $0x8] sm:$0xff] %vm4335_vm1, %v1390_v6  ;;  %v1335_v6 = vld [vmem:[#allocation5 + $0x50] sm:$0xff]  ;;  %vm4347_vm1 = vmmov %vm4314_vm0 }
 0x246   :  { %4339 = vst [vmem:[#allocation16_spill] sm:$0xff] %v3926_v0 }
 0x247   :  { %v1009_v39 = vpop.xlane.xlu2 %1008  ;;  %v1376_v55 = vpop.xlane.xlu0 %1375 }
 0x248   :  { %v3917_v10 = vmax.f32 %v3914_v33, %v1009_v39  ;;  %v1370_v48 = vpop.xlane.xlu1 %1369  ;;  %v1398_v36 = vadd.f32 %v1376_v55, %v1334_v47  ;;  %v1339_v39 = vld [vmem:[#allocation5 + $0x70] sm:$0xff] }
 0x249   :  { %v1395_v22 = vadd.f32 %v1370_v48, %v1331_v7 }
 0x24a   :  { %1543 = vst.msk [vmem:[#allocation3 + $0x50] sm:$0xff] %vm4336_vm7, %v3917_v10  ;;  %1136 = vperm.xlu2 %2223, %v3917_v10   ;;  %vm4348_vm7 = vmmov %vm4314_vm0 }
 0x24b   :  { %1411 = vst.msk [vmem:[#allocation5 + $0x30] sm:$0xff] %vm4337_vm2, %v1395_v22  ;;  %v3940_v22 = vld [vmem:[#allocation3 + $0x18] sm:$0xff]  ;;  %vm4349_vm2 = vmmov %vm4314_vm0 }
 0x24c   :  { %1414 = vst.msk [vmem:[#allocation5 + $0x48] sm:$0xff] %vm4338_vm12, %v1398_v36  ;;  %v3938_v36 = vld [vmem:[#allocation3 + $0x38] sm:$0xff]  ;;  %vm4352_vm12 = vmmov %vm4314_vm0 }
 0x24d   :  { %4343 = vst [vmem:[#allocation18_spill] sm:$0xff] %v3938_v36 }
 0x24e   :  { %4344 = vst [vmem:[#allocation19_spill] sm:$0xff] %v3940_v22 }
 0x24f   :  { %v1378_v5 = vpop.xlane.xlu2 %1377  ;;  %v1017_v54 = vpop.xlane.xlu0 %1016 }
 0x250   :  { %v1399_v47 = vadd.f32 %v1378_v5, %v1335_v6  ;;  %v1386_v48 = vpop.xlane.xlu1 %1385  ;;  %v3929_v7 = vmax.f32 %v3926_v0, %v1017_v54  ;;  %v1332_v5 = vld [vmem:[#allocation5 + $0x38] sm:$0xff] }
 0x251   :  { %v1403_v55 = vadd.f32 %v1386_v48, %v1339_v39 }
 0x252   :  { %4340 = vst [vmem:[#allocation17_spill] sm:$0xff] %v3929_v7  ;;  %1156 = vperm.xlu1 %2225, %v3929_v7  }
 0x253   :  { %1415 = vst.msk [vmem:[#allocation5 + $0x50] sm:$0xff] %vm4314_vm0, %v1399_v47 }
 0x254   :  { %1419 = vst.msk [vmem:[#allocation5 + $0x70] sm:$0xff] %vm4341_vm11, %v1403_v55  ;;  %vm4355_vm11 = vmmov %vm4314_vm0 }
 0x255   :  { %1547 = vst.msk [vmem:[#allocation3 + $0x70] sm:$0xff] %vm4342_vm3, %v3929_v7  ;;  %v3970_v7 = vld [vmem:[#allocation3 + $0x78] sm:$0xff]  ;;  %vm4356_vm3 = vmmov %vm4314_vm0 }
 0x256   :  { %4353 = vst [vmem:[#allocation24_spill] sm:$0xff] %v3970_v7 }
 0x257   :  { %v1003_v54 = vpop.xlane.xlu2 %1002  ;;  %v1372_v6 = vpop.xlane.xlu0 %1371 }
 0x258   :  { %v3943_v39 = vmax.f32 %v3938_v36, %v1003_v54  ;;  %v995_v47 = vpop.xlane.xlu1 %994  ;;  %v1396_v48 = vadd.f32 %v1372_v6, %v1332_v5  ;;  %v3959_v5 = vld [vmem:[#allocation3 + $0x58] sm:$0xff] }
 0x259   :  { %v3946_v38 = vmax.f32 %v3940_v22, %v995_v47  ;;  %4350 = vst [vmem:[#allocation22_spill] sm:$0xff] %v3959_v5  ;;  %v1328_v54 = vld [vmem:[#allocation5 + $0x18] sm:$0xff] }
 0x25a   :  { %4345 = vst [vmem:[#allocation20_spill] sm:$0xff] %v3943_v39  ;;  %1121 = vperm.xlu2 %2223, %v3943_v39  }
 0x25b   :  { %4346 = vst [vmem:[#allocation21_spill] sm:$0xff] %v3946_v38  ;;  %1101 = vperm.xlu0 %2224, %v3946_v38  }
 0x25c   :  { %1540 = vst.msk [vmem:[#allocation3 + $0x38] sm:$0xff] %vm4347_vm1, %v3943_v39  ;;  %vm4357_vm1 = vmmov %vm4314_vm0 }
 0x25d   :  { %1536 = vst.msk [vmem:[#allocation3 + $0x18] sm:$0xff] %vm4348_vm7, %v3946_v38  ;;  %vm4364_vm7 = vnez %v4284_v49 }
 0x25e   :  { %1412 = vst.msk [vmem:[#allocation5 + $0x38] sm:$0xff] %vm4349_vm2, %v1396_v48  ;;  %v1340_v48 = vld [vmem:[#allocation5 + $0x78] sm:$0xff]  ;;  %vm4366_vm2 = vnez %v4288_v20 }
 0x25f   :  { %v1011_v6 = vpop.xlane.xlu0 %1010 }
 0x260   :  { %v1364_v47 = vpop.xlane.xlu1 %1363  ;;  %v3962_v55 = vmax.f32 %v3959_v5, %v1011_v6 }
 0x261   :  { %v1392_v0 = vadd.f32 %v1364_v47, %v1328_v54 }
 0x262   :  { %4351 = vst [vmem:[#allocation23_spill] sm:$0xff] %v3962_v55  ;;  %1141 = vperm.xlu1 %2225, %v3962_v55  }
 0x263   :  { %1544 = vst.msk [vmem:[#allocation3 + $0x58] sm:$0xff] %vm4352_vm12, %v3962_v55  ;;  %vm4367_vm12 = vnez %v4206_v42 }
 0x264   :  { %1408 = vst.msk [vmem:[#allocation5 + $0x18] sm:$0xff] %vm4314_vm0, %v1392_v0  ;;  %v1336_v0 = vld [vmem:[#allocation5 + $0x58] sm:$0xff]  ;;  %vm4371_vm0 = vnez %v4264_v44 }
 0x267   :  { %v1388_v38 = vpop.xlane.xlu0 %1387 }
 0x268   :  { %v1019_v22 = vpop.xlane.xlu1 %1018  ;;  %v1404_v36 = vadd.f32 %v1388_v38, %v1340_v48 }
 0x269   :  { %v3973_v6 = vmax.f32 %v3970_v7, %v1019_v22 }
 0x26a   :  { %1420 = vst.msk [vmem:[#allocation5 + $0x78] sm:$0xff] %vm4355_vm11, %v1404_v36 }
 0x26b   :  { %4354 = vst [vmem:[#allocation25_spill] sm:$0xff] %v3973_v6  ;;  %1161 = vperm.xlu0 %2224, %v3973_v6  }
 0x26c   :  { %1548 = vst.msk [vmem:[#allocation3 + $0x78] sm:$0xff] %vm4356_vm3, %v3973_v6 }
 0x270   :  { %v1380_v47 = vpop.xlane.xlu1 %1379 }
 0x271   :  { %v1400_v39 = vadd.f32 %v1380_v47, %v1336_v0 }
 0x273   :  { %1416 = vst.msk [vmem:[#allocation5 + $0x58] sm:$0xff] %vm4357_vm1, %v1400_v39 }
 0x275   :  { %v1087_v55 = vpop.permute.xlu2 %1086 }
 0x276   :  { %v1164_v38 = vsub.f32 %v3589_v26, %v1087_v55 }
 0x278   :  { %v1180_v22 = vmul.f32 1.442695, %v1164_v38 }
 0x27a   :  { %2291 = vpow2.f32 %v1180_v22 }
 0x27d   :  { %v1107_v48 = vpop.permute.xlu2 %1106 }
 0x27e   :  { %v1168_v36 = vsub.f32 %v3591_v3, %v1107_v48 }
 0x280   :  { %v2292_v5 = vpop.eup %2291  ;;  %v1188_v54 = vmul.f32 1.442695, %v1168_v36 }
 0x281   :  { %v1212_v7 = vsel %vm3355_vm9, %v2292_v5, 0.0  ;;  %vm4358_vm9 = vnez %v4260_v41 }
 0x282   :  { %2293 = vpow2.f32 %v1188_v54 }
 0x283   :  { %1260 = vadd.xlane.f32.xlu2 %v1212_v7 }
 0x285   :  { %v1152_v7 = vpop.permute.xlu2 %1151 }
 0x286   :  { %v1177_v54 = vsub.f32 %v3621_v21, %v1152_v7 }
 0x288   :  { %v2294_v6 = vpop.eup %2293 }
 0x289   :  { %v1216_v0 = vsel %vm3450_vm15, %v2294_v6, 0.0  ;;  %vm4360_vm15 = vnez %v4210_v45 }
 0x28c   :  { %1268 = vadd.xlane.f32.xlu1 %v1216_v0 }
 0x294   :  { %v1127_v39 = vpop.permute.xlu1 %1126 }
 0x295   :  { %v1172_v26 = vsub.f32 %v3602_v23, %v1127_v39 }
 0x297   :  { %v1196_v55 = vmul.f32 1.442695, %v1172_v26 }
 0x299   :  { %2295 = vpow2.f32 %v1196_v55 }
 0x29d   :  { %v1147_v47 = vpop.permute.xlu0 %1146 }
 0x29e   :  { %v1176_v3 = vsub.f32 %v3604_v32, %v1147_v47  ;;  %v1206_v32 = vmul.f32 1.442695, %v1177_v54 }
 0x29f   :  { %v2296_v38 = vpop.eup %2295 }
 0x2a0   :  { %v1204_v22 = vmul.f32 1.442695, %v1176_v3  ;;  %v1220_v4 = vsel %vm3516_vm14, %v2296_v38, 0.0  ;;  %vm4361_vm14 = vnez %v4250_v1 }
 0x2a1   :  { %1276 = vadd.xlane.f32.xlu0 %v1220_v4 }
 0x2a2   :  { %2297 = vpow2.f32 %v1204_v22 }
 0x2a4   :  { %v1137_v0 = vpop.permute.xlu2 %1136 }
 0x2a5   :  { %v1092_v5 = vpop.permute.xlu0 %1091 }
 0x2a6   :  { %v1165_v62 = vsub.f32 %v3638_v31, %v1092_v5  ;;  %v1174_v31 = vsub.f32 %v3697_v29, %v1137_v0 }
 0x2a8   :  { %v2298_v6 = vpop.eup %2297  ;;  %v1182_v23 = vmul.f32 1.442695, %v1165_v62  ;;  %v1200_v3 = vmul.f32 1.442695, %v1174_v31  ;;  %v4365_v31 = vmov 0.0  }
 0x2a9   :  { %v1224_v48 = vsel %vm3509_vm13, %v2298_v6, 0.0  ;;  %vm4359_vm13 = vnez %v4226_v58  ;;  %v2136_v42 = vsel %vm3793_vm4, 1.0, %v4365_v31  ;;  %vm4373_vm4 = vmmov %vm4357_vm1 }
 0x2aa   :  { %2299 = vpow2.f32 %v1182_v23  ;;  %1284 = vadd.xlane.f32.xlu2 %v1224_v48 }
 0x2ab   :  { %2301 = vpow2.f32 %v1206_v32 }
 0x2ac   :  { %v1112_v36 = vpop.permute.xlu1 %1111 }
 0x2ad   :  { %v1169_v40 = vsub.f32 %v3606_v17, %v1112_v36  ;;  %v1132_v39 = vpop.permute.xlu0 %1131 }
 0x2ae   :  { %v1173_v26 = vsub.f32 %v3664_v57, %v1132_v39 }
 0x2af   :  { %v1190_v55 = vmul.f32 1.442695, %v1169_v40 }
 0x2b0   :  { %v2300_v47 = vpop.eup %2299  ;;  %v1198_v21 = vmul.f32 1.442695, %v1173_v26 }
 0x2b1   :  { %2303 = vpow2.f32 %v1190_v55  ;;  %v1213_v60 = vsel %vm4265_vm8, %v2300_v47, 0.0  ;;  %v2302_v7 = vpop.eup %2301  ;;  %vm4363_vm8 = vnez %v4235_v28 }
 0x2b2   :  { %2305 = vpow2.f32 %v1198_v21  ;;  %1262 = vadd.xlane.f32.xlu1 %v1213_v60  ;;  %v1225_v23 = vsel %vm4358_vm9, %v2302_v7, 0.0 }
 0x2b3   :  { %2307 = vpow2.f32 %v1200_v3 }
 0x2b4   :  { %v1097_v38 = vpop.permute.xlu1 %1096  ;;  %v1122_v22 = vpop.permute.xlu2 %1121 }
 0x2b5   :  { %v1166_v17 = vsub.f32 %v3660_v27, %v1097_v38  ;;  %v1117_v4 = vpop.permute.xlu0 %1116  ;;  %v1171_v29 = vsub.f32 %v3742_v56, %v1122_v22 }
 0x2b6   :  { %v1170_v57 = vsub.f32 %v3684_v51, %v1117_v4 }
 0x2b7   :  { %v2304_v5 = vpop.eup %2303  ;;  %v1184_v62 = vmul.f32 1.442695, %v1166_v17  ;;  %v1194_v51 = vmul.f32 1.442695, %v1171_v29 }
 0x2b8   :  { %v2306_v6 = vpop.eup %2305  ;;  %v1192_v54 = vmul.f32 1.442695, %v1170_v57  ;;  %v1217_v37 = vsel %vm4269_vm5, %v2304_v5, 0.0  ;;  %vm4362_vm5 = vnez %v4212_v59  ;;  %v4370_v57 = vsub.f32 %v3806_v46, %v3811_v50 }
 0x2b9   :  { %1270 = vadd.xlane.f32.xlu0 %v1217_v37  ;;  %v1221_v27 = vsel %vm4359_vm13, %v2306_v6, 0.0  ;;  %2309 = vpow2.f32 %v1184_v62  ;;  %v2308_v48 = vpop.eup %2307  ;;  %v1232_v37 = vld [vmem:[#allocation4 + $0x20] sm:$0xff] }
 0x2ba   :  { %1286 = vadd.xlane.f32.xlu1 %v1225_v23  ;;  %1278 = vadd.xlane.f32.xlu2 %v1221_v27  ;;  %2311 = vpow2.f32 %v1192_v54  ;;  %v1222_v36 = vsel %vm4361_vm14, %v2308_v48, 0.0  ;;  %v1060_v5 = vmul.f32 1.442695, %v4370_v57  ;;  %vm4379_vm14 = vmmov %vm4373_vm4  ;;  %v1229_v57 = vld [vmem:[#allocation4 + $0x8] sm:$0xff] }
 0x2bb   :  { %2313 = vpow2.f32 %v1194_v51 }
 0x2bf   :  { %v2310_v32 = vpop.eup %2309 }
 0x2c0   :  { %v2312_v56 = vpop.eup %2311  ;;  %v1214_v13 = vsel %vm4360_vm15, %v2310_v32, 0.0  ;;  %v4374_v32 = vsub.f32 %v3826_v19, %v3829_v2  ;;  %v4375_v19 = vsub.f32 %v3841_v25, %v3847_v34  ;;  %vm4377_vm15 = vmmov %vm4373_vm4 }
 0x2c1   :  { %1264 = vadd.xlane.f32.xlu0 %v1214_v13  ;;  %v1218_v58 = vsel %vm4362_vm5, %v2312_v56, 0.0  ;;  %v2314_v40 = vpop.eup %2313  ;;  %vm4385_vm5 = vmmov %vm4373_vm4 }
 0x2c2   :  { %1280 = vadd.xlane.f32.xlu1 %v1222_v36  ;;  %1272 = vadd.xlane.f32.xlu2 %v1218_v58  ;;  %v1219_v26 = vsel %vm4363_vm8, %v2314_v40, 0.0  ;;  %v1068_v56 = vmul.f32 1.442695, %v4374_v32  ;;  %v1584_v40 = vld [vmem:[#allocation3] sm:$0xff]  ;;  %v1076_v2 = vmul.f32 1.442695, %v4375_v19  ;;  %vm4393_vm8 = vmmov %vm4373_vm4 }
 0x2c4   :  { %v1157_v41 = vpop.permute.xlu1 %1156 }
 0x2c5   :  { %v1178_v0 = vsub.f32 %v3715_v52, %v1157_v41  ;;  %v2135_v52 = vsel %vm4366_vm2, 1.0, %v4365_v31  ;;  %vm4398_vm2 = vmmov %vm4373_vm4 }
 0x2c7   :  { %v1208_v39 = vmul.f32 1.442695, %v1178_v0 }
 0x2c9   :  { %2315 = vpow2.f32 %v1208_v39 }
 0x2ca   :  { %1274 = vadd.xlane.f32.xlu1 %v1219_v26 }
 0x2cd   :  { %v1102_v45 = vpop.permute.xlu0 %1101 }
 0x2ce   :  { %v1167_v1 = vsub.f32 %v3745_v9, %v1102_v45 }
 0x2cf   :  { %v2316_v55 = vpop.eup %2315 }
 0x2d0   :  { %v1186_v47 = vmul.f32 1.442695, %v1167_v1  ;;  %v1226_v59 = vsel %vm4364_vm7, %v2316_v55, 0.0  ;;  %v1664_v55 = vld [vmem:[#allocation5] sm:$0xff]  ;;  %vm4397_vm7 = vmmov %vm4373_vm4 }
 0x2d1   :  { %1288 = vadd.xlane.f32.xlu0 %v1226_v59 }
 0x2d2   :  { %2317 = vpow2.f32 %v1186_v47  ;;  %1497 = vadd.xlane.f32.xlu1 %v2135_v52 }
 0x2d4   :  { %v1142_v21 = vpop.permute.xlu1 %1141 }
 0x2d5   :  { %v1175_v28 = vsub.f32 %v3763_v11, %v1142_v21  ;;  %v4368_v11 = vsub.f32 %v3808_v61, %v3814_v15  ;;  %v2134_v61 = vsel %vm4371_vm0, 1.0, %v4365_v31  ;;  %v1228_v15 = vld [vmem:[#allocation4] sm:$0xff]  ;;  %vm4404_vm0 = vmmov %vm4398_vm2 }
 0x2d6   :  { %v1236_v21 = vld [vmem:[#allocation4 + $0x40] sm:$0xff] }
 0x2d7   :  { %v1202_v60 = vmul.f32 1.442695, %v1175_v28  ;;  %v1052_v7 = vmul.f32 1.442695, %v4368_v11 }
 0x2d8   :  { %v2318_v3 = vpop.eup %2317 }
 0x2d9   :  { %2319 = vpow2.f32 %v1202_v60  ;;  %v1215_v9 = vsel %vm4367_vm12, %v2318_v3, 0.0  ;;  %vm4399_vm12 = vmmov %vm4398_vm2 }
 0x2da   :  { %1266 = vadd.xlane.f32.xlu2 %v1215_v9 }
 0x2dd   :  { %v1162_v38 = vpop.permute.xlu0 %1161 }
 0x2de   :  { %v1179_v49 = vsub.f32 %v3786_v8, %v1162_v38  ;;  %v4378_v38 = vsub.f32 %v3860_v18, %v3863_v63 }
 0x2df   :  { %v2320_v22 = vpop.eup %2319 }
 0x2e0   :  { %v1210_v17 = vmul.f32 1.442695, %v1179_v49  ;;  %v1223_v20 = vsel %vm3563_vm6, %v2320_v22, 0.0  ;;  %vm4369_vm6 = vcmp.gt.f32.partialorder %v3658_v43, 0.0  ;;  %v1054_v25 = vmul.f32 1.442695, %v4378_v38 }
 0x2e1   :  { %1282 = vadd.xlane.f32.xlu0 %v1223_v20  ;;  %v1712_v24 = vsel %vm4369_vm6, %v3658_v43, 1.0  ;;  %vm4376_vm13 = vmmov %vm4369_vm6  ;;  %v1240_v49 = vld [vmem:[#allocation4 + $0x60] sm:$0xff]  ;;  %v4380_v22 = vsub.f32 %v3839_v12, %v3844_v30 }
 0x2e2   :  { %2321 = vpow2.f32 %v1210_v17  ;;  %vm1733_vm11 = vweird.f32 %v1712_v24  ;;  %v1739_v36 = vand.u32 2147483648, %v1712_v24  ;;  %v1737_v41 = vand.u32 2147483647, %v1712_v24  ;;  %v4386_v30 = vld [vmem:[#allocation10_spill] sm:$0xff]  ;;  %vm4403_vm6 = vmmov %vm4398_vm2 }
 0x2e3   :  { %2323 = vpow2.f32 %v1052_v7  ;;  %v1078_v17 = vmul.f32 1.442695, %v4380_v22  ;;  %v1235_v22 = vld [vmem:[#allocation4 + $0x38] sm:$0xff] }
 0x2e4   :  { %2325 = vrcp.f32 %v1712_v24  ;;  %v1740_v26 = vor.u32 1.1754944e-38, %v1739_v36  ;;  %vm1738_vm9 = vcmp.eq.f32.partialorder %v1737_v41, 8.507059e+37  ;;  %v4394_v41 = vld [vmem:[#allocation18_spill] sm:$0xff] }
 0x2e5   :  { %2327 = vpow2.f32 %v1060_v5 }
 0x2e8   :  { %v2322_v4 = vpop.eup %2321 }
 0x2e9   :  { %1499 = vadd.xlane.f32.xlu0 %v2136_v42  ;;  %v1227_v8 = vsel %vm3782_vm10, %v2322_v4, 0.0  ;;  %v2324_v16 = vpop.eup %2323  ;;  %vm4372_vm10 = vmmov %vm4357_vm1  ;;  %v4381_v4 = vsub.f32 %v3874_v53, %v3882_v35  ;;  %v4382_v42 = vld [vmem:[#allocation11_spill] sm:$0xff] }
 0x2ea   :  { %1290 = vadd.xlane.f32.xlu2 %v1227_v8  ;;  %v1244_v14 = vmul.f32 %v2324_v16, %v1228_v15  ;;  %v2326_v29 = vpop.eup %2325  ;;  %v4383_v8 = vld [vmem:[#allocation13_spill] sm:$0xff] }
 0x2eb   :  { %v2328_v54 = vpop.eup %2327  ;;  %v1729_v23 = vmul.f32 %v2326_v29, %v1712_v24  ;;  %vm1734_vm3 = vweird.f32 %v2326_v29  ;;  %v1062_v11 = vmul.f32 1.442695, %v4381_v4  ;;  %v4384_v18 = vsub.f32 %v4382_v42, %v4383_v8 }
 0x2ec   :  { %v1248_v46 = vmul.f32 %v2328_v54, %v1232_v37  ;;  %vm1735_vm1 = vmor %vm1733_vm11, %vm1734_vm3  ;;  %v4391_v54 = vld [vmem:[#allocation15_spill] sm:$0xff] }
 0x2ed   :  { %v1730_v27 = vsub.f32 1.0, %v1729_v23  ;;  %v1070_v63 = vmul.f32 1.442695, %v4384_v18  ;;  %vm4413_vm11 = vmmov %vm4404_vm0 }
 0x2ee   :  { %vm4414_vm3 = vmmov %vm4404_vm0 }
 0x2ef   :  { %v1731_v48 = vmul.f32 %v2326_v29, %v1730_v27  ;;  %v1241_v27 = vld [vmem:[#allocation4 + $0x68] sm:$0xff] }
 0x2f1   :  { %v1732_v58 = vadd.f32 %v2326_v29, %v1731_v48 }
 0x2f2   :  { %1495 = vadd.xlane.f32.xlu2 %v2134_v61  ;;  %v4387_v61 = vld [vmem:[#allocation12_spill] sm:$0xff] }
 0x2f3   :  { %v1736_v45 = vsel %vm1735_vm1, %v2326_v29, %v1732_v58  ;;  %v4388_v16 = vsub.f32 %v4386_v30, %v4387_v61  ;;  %v4390_v29 = vld [vmem:[#allocation14_spill] sm:$0xff]  ;;  %vm4418_vm1 = vmmov %vm4404_vm0 }
 0x2f4   :  { %v1741_v59 = vsel %vm1738_vm9, %v1740_v26, %v1736_v45  ;;  %v4392_v37 = vsub.f32 %v4390_v29, %v4391_v54  ;;  %v4410_v61 = vld [vmem:[#allocation22_spill] sm:$0xff]  ;;  %vm4419_vm9 = vmmov %vm4404_vm0 }
 0x2f5   :  { %v1056_v15 = vmul.f32 1.442695, %v4388_v16  ;;  %v4411_v16 = vld [vmem:[#allocation23_spill] sm:$0xff] }
 0x2f6   :  { %v1261_v62 = vpop.xlane.xlu2 %1260  ;;  %v1064_v23 = vmul.f32 1.442695, %v4392_v37  ;;  %v4415_v37 = vld [vmem:[#allocation24_spill] sm:$0xff] }
 0x2f7   :  { %v1292_v6 = vadd.f32 %v1261_v62, %v1244_v14  ;;  %v4389_v14 = vsub.f32 %v3914_v33, %v3917_v10 }
 0x2f9   :  { %1309 = vst.msk [vmem:[#allocation4] sm:$0xff] %vm4372_vm10, %v1292_v6  ;;  %v1072_v62 = vmul.f32 1.442695, %v4389_v14  ;;  %vm4405_vm10 = vmmov %vm4404_vm0 }
 0x2ff   :  { %v1269_v50 = vpop.xlane.xlu1 %1268 }
 0x300   :  { %v1600_v51 = vld [vmem:[#allocation4] sm:$0xff]  ;;  %v1296_v44 = vadd.f32 %v1269_v50, %v1248_v46  ;;  %v1233_v46 = vld [vmem:[#allocation4 + $0x28] sm:$0xff] }
 0x301   :  { %2329 = vlog2.f32 %v1600_v51  ;;  %v1237_v51 = vld [vmem:[#allocation4 + $0x48] sm:$0xff] }
 0x302   :  { %1313 = vst.msk [vmem:[#allocation4 + $0x20] sm:$0xff] %vm4373_vm4, %v1296_v44  ;;  %2331 = vpow2.f32 %v1068_v56  ;;  %vm4409_vm4 = vmmov %vm4404_vm0 }
 0x303   :  { %2333 = vpow2.f32 %v1076_v2 }
 0x304   :  { %2335 = vpow2.f32 %v1054_v25 }
 0x305   :  { %2337 = vpow2.f32 %v1078_v17 }
 0x306   :  { %2339 = vpow2.f32 %v1062_v11  ;;  %v4406_v11 = vld [vmem:[#allocation19_spill] sm:$0xff] }
 0x307   :  { %v2330_v13 = vpop.eup %2329  ;;  %2341 = vpow2.f32 %v1070_v63  ;;  %v1242_v63 = vld [vmem:[#allocation4 + $0x70] sm:$0xff] }
 0x308   :  { %v1617_v0 = vmul.f32 0.6931472, %v2330_v13  ;;  %v2332_v31 = vpop.eup %2331  ;;  %2343 = vpow2.f32 %v1056_v15  ;;  %v4412_v15 = vsub.f32 %v4410_v61, %v4411_v16 }
 0x309   :  { %v1252_v60 = vmul.f32 %v2332_v31, %v1236_v21  ;;  %v2334_v34 = vpop.eup %2333  ;;  %2345 = vpow2.f32 %v1072_v62  ;;  %v1231_v62 = vld [vmem:[#allocation4 + $0x18] sm:$0xff] }
 0x30a   :  { %v1648_v39 = vadd.f32 %v1617_v0, %v1584_v40  ;;  %v2336_v24 = vpop.eup %2335  ;;  %2347 = vpow2.f32 %v1064_v23  ;;  %v4395_v0 = vld [vmem:[#allocation20_spill] sm:$0xff]  ;;  %v4416_v23 = vld [vmem:[#allocation25_spill] sm:$0xff] }
 0x30b   :  { %v1245_v5 = vmul.f32 %v2336_v24, %v1229_v57  ;;  %v2338_v35 = vpop.eup %2337  ;;  %v4396_v40 = vsub.f32 %v4394_v41, %v4395_v0  ;;  %v1435_v24 = vld [vmem:[#allocation6 + $0x70] sm:$0xff] }
 0x30c   :  { %v1680_v1 = vmul.f32 %v1648_v39, %v3658_v43  ;;  %v1256_v43 = vmul.f32 %v2334_v34, %v1240_v49  ;;  %v2340_v6 = vpop.eup %2339  ;;  %v1257_v48 = vmul.f32 %v2338_v35, %v1241_v27 }
 0x30d   :  { %v2342_v50 = vpop.eup %2341  ;;  %v1249_v44 = vmul.f32 %v2340_v6, %v1233_v46  ;;  %v1066_v39 = vmul.f32 1.442695, %v4396_v40  ;;  %v4417_v46 = vsub.f32 %v4415_v37, %v4416_v23  ;;  %v1434_v40 = vld [vmem:[#allocation6 + $0x68] sm:$0xff] }
 0x30e   :  { %v1696_v47 = vsub.f32 %v1664_v55, %v1680_v1  ;;  %v1253_v32 = vmul.f32 %v2342_v50, %v1237_v51  ;;  %v2344_v26 = vpop.eup %2343  ;;  %v1238_v1 = vld [vmem:[#allocation4 + $0x50] sm:$0xff]  ;;  %v1239_v51 = vld [vmem:[#allocation4 + $0x58] sm:$0xff] }
 0x30f   :  { %v2346_v45 = vpop.eup %2345  ;;  %v1230_v55 = vld [vmem:[#allocation4 + $0x10] sm:$0xff]  ;;  %2349 = vpow2.f32 %v1066_v39  ;;  %v1082_v50 = vmul.f32 1.442695, %v4417_v46 }
 0x310   :  { %v1742_v52 = vmul.f32 %v1741_v59, %v1696_v47  ;;  %v2348_v47 = vpop.eup %2347  ;;  %v1234_v59 = vld [vmem:[#allocation4 + $0x30] sm:$0xff]  ;;  %v1254_v19 = vmul.f32 %v2346_v45, %v1238_v1  ;;  %v1246_v2 = vmul.f32 %v2344_v26, %v1230_v55 }
 0x312   :  { %v2000_v28 = vsel %vm4376_vm13, %v1742_v52, 0.0  ;;  %v1250_v52 = vmul.f32 %v2348_v47, %v1234_v59  ;;  %vm4420_vm13 = vmmov %vm4404_vm0 }
 0x313   :  { %2016 = vst.msk [vmem:[%s4120_s4] sm:$0xff] %vm4377_vm15, %v2000_v28  ;;  %v4400_v28 = vld [vmem:[#allocation16_spill] sm:$0xff]  ;;  %vm4421_vm15 = vmmov %vm4404_vm0 }
 0x314   :  { %v1277_v3 = vpop.xlane.xlu0 %1276 }
 0x315   :  { %v1300_v9 = vadd.f32 %v1277_v3, %v1252_v60  ;;  %v4401_v60 = vld [vmem:[#allocation17_spill] sm:$0xff] }
 0x316   :  { %v4402_v3 = vsub.f32 %v4400_v28, %v4401_v60 }
 0x317   :  { %1317 = vst.msk [vmem:[#allocation4 + $0x40] sm:$0xff] %vm4379_vm14, %v1300_v9  ;;  %vm4422_vm14 = vmmov %vm4404_vm0 }
 0x318   :  { %v1080_v9 = vmul.f32 1.442695, %v4402_v3 }
 0x31a   :  { %2351 = vpow2.f32 %v1080_v9 }
 0x31d   :  { %v1285_v20 = vpop.xlane.xlu2 %1284 }
 0x31e   :  { %v1304_v7 = vadd.f32 %v1285_v20, %v1256_v43  ;;  %v2350_v43 = vpop.eup %2349 }
 0x31f   :  { %v1251_v17 = vmul.f32 %v2350_v43, %v1235_v22 }
 0x320   :  { %1321 = vst.msk [vmem:[#allocation4 + $0x60] sm:$0xff] %vm4385_vm5, %v1304_v7  ;;  %v4407_v7 = vld [vmem:[#allocation21_spill] sm:$0xff]  ;;  %v2352_v18 = vpop.eup %2351 }
 0x321   :  { %v4408_v42 = vsub.f32 %v4406_v11, %v4407_v7  ;;  %v1258_v57 = vmul.f32 %v2352_v18, %v1242_v63 }
 0x323   :  { %v1058_v8 = vmul.f32 1.442695, %v4408_v42 }
 0x325   :  { %v1263_v12 = vpop.xlane.xlu1 %1262  ;;  %2353 = vpow2.f32 %v1058_v8 }
 0x326   :  { %v1293_v53 = vadd.f32 %v1263_v12, %v1245_v5 }
 0x328   :  { %1310 = vst.msk [vmem:[#allocation4 + $0x8] sm:$0xff] %vm4393_vm8, %v1293_v53  ;;  %v1074_v53 = vmul.f32 1.442695, %v4412_v15 }
 0x32a   :  { %2355 = vpow2.f32 %v1074_v53 }
 0x32b   :  { %v2354_v14 = vpop.eup %2353  ;;  %2357 = vpow2.f32 %v1082_v50 }
 0x32c   :  { %v1271_v56 = vpop.xlane.xlu0 %1270  ;;  %v1247_v6 = vmul.f32 %v2354_v14, %v1231_v62 }
 0x32d   :  { %v1287_v33 = vpop.xlane.xlu1 %1286  ;;  %v1279_v10 = vpop.xlane.xlu2 %1278  ;;  %v1297_v13 = vadd.f32 %v1271_v56, %v1249_v44 }
 0x32e   :  { %v1305_v36 = vadd.f32 %v1287_v33, %v1257_v48  ;;  %v1301_v58 = vadd.f32 %v1279_v10, %v1253_v32  ;;  %v1243_v33 = vld [vmem:[#allocation4 + $0x78] sm:$0xff] }
 0x32f   :  { %1314 = vst.msk [vmem:[#allocation4 + $0x28] sm:$0xff] %vm4397_vm7, %v1297_v13  ;;  %v1436_v10 = vld [vmem:[#allocation6 + $0x78] sm:$0xff] }
 0x330   :  { %1322 = vst.msk [vmem:[#allocation4 + $0x68] sm:$0xff] %vm4398_vm2, %v1305_v36  ;;  %v2356_v27 = vpop.eup %2355 }
 0x331   :  { %1318 = vst.msk [vmem:[#allocation4 + $0x48] sm:$0xff] %vm4399_vm12, %v1301_v58  ;;  %v1255_v44 = vmul.f32 %v2356_v27, %v1239_v51  ;;  %v2358_v56 = vpop.eup %2357 }
 0x332   :  { %v1259_v13 = vmul.f32 %v2358_v56, %v1243_v33 }
 0x334   :  { %v1265_v21 = vpop.xlane.xlu0 %1264 }
 0x335   :  { %v1281_v31 = vpop.xlane.xlu1 %1280  ;;  %v1273_v25 = vpop.xlane.xlu2 %1272  ;;  %v1294_v34 = vadd.f32 %v1265_v21, %v1246_v2 }
 0x336   :  { %v1302_v38 = vadd.f32 %v1281_v31, %v1254_v19  ;;  %v1298_v49 = vadd.f32 %v1273_v25, %v1250_v52 }
 0x337   :  { %1311 = vst.msk [vmem:[#allocation4 + $0x10] sm:$0xff] %vm4405_vm10, %v1294_v34 }
 0x338   :  { %1319 = vst.msk [vmem:[#allocation4 + $0x50] sm:$0xff] %vm4403_vm6, %v1302_v38 }
 0x339   :  { %1315 = vst.msk [vmem:[#allocation4 + $0x30] sm:$0xff] %vm4404_vm0, %v1298_v49 }
 0x33d   :  { %v1275_v20 = vpop.xlane.xlu1 %1274 }
 0x33e   :  { %v1299_v4 = vadd.f32 %v1275_v20, %v1251_v17 }
 0x340   :  { %1316 = vst.msk [vmem:[#allocation4 + $0x38] sm:$0xff] %vm4409_vm4, %v1299_v4 }
 0x344   :  { %v1289_v5 = vpop.xlane.xlu0 %1288 }
 0x345   :  { %v1498_v12 = vpop.xlane.xlu1 %1497  ;;  %v1306_v30 = vadd.f32 %v1289_v5, %v1258_v57 }
 0x346   :  { %v1515_v35 = vadd.f32 %v1498_v12, %v1435_v24 }
 0x347   :  { %1323 = vst.msk [vmem:[#allocation4 + $0x70] sm:$0xff] %vm4413_vm11, %v1306_v30 }
 0x348   :  { %1531 = vst.msk [vmem:[#allocation6 + $0x70] sm:$0xff] %vm4414_vm3, %v1515_v35 }
 0x34d   :  { %v1267_v29 = vpop.xlane.xlu2 %1266 }
 0x34e   :  { %v1295_v54 = vadd.f32 %v1267_v29, %v1247_v6 }
 0x350   :  { %1312 = vst.msk [vmem:[#allocation4 + $0x18] sm:$0xff] %vm4418_vm1, %v1295_v54 }
 0x354   :  { %v1283_v48 = vpop.xlane.xlu0 %1282 }
 0x355   :  { %v1303_v32 = vadd.f32 %v1283_v48, %v1255_v44 }
 0x357   :  { %1320 = vst.msk [vmem:[#allocation4 + $0x58] sm:$0xff] %vm4419_vm9, %v1303_v32 }
 0x35c   :  { %v1500_v36 = vpop.xlane.xlu0 %1499 }
 0x35d   :  { %v1291_v58 = vpop.xlane.xlu2 %1290  ;;  %v1516_v41 = vadd.f32 %v1500_v36, %v1436_v10 }
 0x35e   :  { %v1307_v0 = vadd.f32 %v1291_v58, %v1259_v13 }
 0x35f   :  { %1532 = vst.msk [vmem:[#allocation6 + $0x78] sm:$0xff] %vm4420_vm13, %v1516_v41 }
 0x360   :  { %1324 = vst.msk [vmem:[#allocation4 + $0x78] sm:$0xff] %vm4421_vm15, %v1307_v0 }
 0x365   :  { %v1496_v39 = vpop.xlane.xlu2 %1495 }
 0x366   :  { %v1514_v26 = vadd.f32 %v1496_v39, %v1434_v40 }
 0x368   :  { %1530 = vst.msk [vmem:[#allocation6 + $0x68] sm:$0xff] %vm4422_vm14, %v1514_v26 }
 0x369   :  { %2088 = vsyncpa [#allocation8], 1 }

</bundles_post_ra>
